<compile_context>
chip_gen: v7x
topology: tpu7x:2x2x1
jax: 0.10.0
libtpu: 0.0.40
codegen_flags: <defaults>
</compile_context>

<pallas_src>
import functools

import jax
import jax.numpy as jnp
from jax import lax
from jax.experimental import pallas as pl
from jax.experimental.pallas import tpu as pltpu


def _round_up(x, m):
    return (x + m - 1) // m * m


def _cdiv(a, b):
    return -(-a // b)


def gru_kernel(x_ref, wih_ref, whh_ref, bih_ref, bhh_ref, h_out_ref, gi_scratch,
               *, n_chunks, chunk_t, last_chunk_steps, unroll):
    """One grid step of the skewed phase-1 / phase-2 GRU pipeline.

    x_ref:      (chunk_t, B_tile, E_pad)        embedded inputs for chunk min(c, n_chunks-1)
    wih_ref:    (E_pad, 3*H_pad)                input->hidden weights (gate-aligned)
    whh_ref:    (H_pad, 3*H_pad)                hidden->hidden weights (gate-aligned)
    bih_ref:    (1, 3*H_pad), bhh_ref: same     biases (f32)
    h_out_ref:  (B_tile, H_pad) f32             hidden state, carried resident across c
    gi_scratch: VMEM (2, chunk_t, B_tile, 3*H_pad) f32   double-buffered x @ W_ih + b_ih
    """
    c = pl.program_id(1)

    b_tile, h_pad = h_out_ref.shape
    e_pad = x_ref.shape[-1]

    @pl.when(c == 0)
    def _init():
        h_out_ref[...] = jnp.zeros_like(h_out_ref)

    # ---- Phase 1: hoisted input matmul for chunk c (one big MXU op) -> slot c&1. ----
    @pl.when(c < n_chunks)
    def _phase1():
        x2d = x_ref[...].reshape(chunk_t * b_tile, e_pad)
        gi2d = jnp.dot(x2d, wih_ref[...], preferred_element_type=jnp.float32)
        gi2d = gi2d + bih_ref[...]
        gi_scratch[c & 1] = gi2d.reshape(chunk_t, b_tile, 3 * h_pad)

    # ---- Phase 2: serial recurrence for chunk c-1 from slot (c-1)&1. ----
    @pl.when(c > 0)
    def _phase2():
        slot = (c + 1) & 1                     # == (c - 1) & 1, avoids negative index
        whh = whh_ref[...]
        bhh = bhh_ref[...]

        def step(t, h):
            gi = gi_scratch[slot, t]                                   # (B_tile, 3*H_pad)
            gh = jnp.dot(h.astype(whh.dtype), whh,
                         preferred_element_type=jnp.float32) + bhh     # (B_tile, 3*H_pad)
            # Gate slices are H_pad(=128k)-lane aligned -> no lane relayout.
            r = jax.nn.sigmoid(gi[:, 0:h_pad] + gh[:, 0:h_pad])
            z = jax.nn.sigmoid(gi[:, h_pad:2 * h_pad] + gh[:, h_pad:2 * h_pad])
            n = jnp.tanh(gi[:, 2 * h_pad:] + r * gh[:, 2 * h_pad:])
            return (1.0 - z) * n + z * h

        h0 = h_out_ref[...]
        if last_chunk_steps == chunk_t:
            # T divides evenly: every chunk runs the full static trip count.
            h_out_ref[...] = lax.fori_loop(0, chunk_t, step, h0, unroll=unroll)
        else:
            # Grid step c processes chunk c-1; the last chunk runs at c == n_chunks
            # with a shorter static trip count (no per-step padding mask anywhere).
            @pl.when(c < n_chunks)
            def _full_chunk():
                h_out_ref[...] = lax.fori_loop(0, chunk_t, step, h0, unroll=unroll)

            @pl.when(c == n_chunks)
            def _last_chunk():
                h_out_ref[...] = lax.fori_loop(0, last_chunk_steps, step, h0,
                                               unroll=unroll)


def _pack_gate_matrix(w, in_dim, in_pad, hidden, h_pad, dtype):
    """PyTorch (3H, in_dim) [r,z,n]-stacked weight -> (in_pad, 3*H_pad), gate-aligned.

    Padded rows/columns are zero-filled (required for recurrence correctness)."""
    w_t = jnp.transpose(w).astype(dtype)                      # (in_dim, 3H)
    out = jnp.zeros((in_pad, 3 * h_pad), dtype)
    for g in range(3):
        out = out.at[:in_dim, g * h_pad:g * h_pad + hidden].set(
            w_t[:, g * hidden:(g + 1) * hidden])
    return out


def _pack_gate_bias(b, hidden, h_pad):
    out = jnp.zeros((1, 3 * h_pad), jnp.float32)
    for g in range(3):
        out = out.at[0, g * h_pad:g * h_pad + hidden].set(b[g * hidden:(g + 1) * hidden])
    return out


def tower_d_forward(token_ids, embedding_table, w_ih, w_hh, b_ih, b_hh,
                    *, chunk_t=64, b_tile=None, mxu_dtype=jnp.bfloat16):
    """token_ids: (B, T) int32.  Returns (B, H) f32 — matches PyTorch h_n.squeeze(0).

    mxu_dtype=bfloat16 (default) uses bf16 MXU operands with f32 accumulation; the
    carried hidden state stays f32 but is re-quantized to bf16 for h @ W_hh each step,
    so use a looser tolerance (or mxu_dtype=float32 for bit-accurate comparisons).
    """
    B, T = token_ids.shape
    E = embedding_table.shape[1]
    H = w_hh.shape[1]

    # Padded sizes: 128 lanes for E/H, 8 sublanes for B.
    E_pad = _round_up(E, 128)
    H_pad = _round_up(H, 128)
    B_pad = _round_up(B, 8)

    # Batch tiling: split into >=2 tiles once the batch is big enough so the
    # "parallel" grid axis can be sharded across v7x's two TensorCores.
    if b_tile is None:
        b_tile = B_pad if B_pad <= 8 else _round_up(_cdiv(B_pad, 2), 8)
    b_tile = max(8, _round_up(min(b_tile, B_pad), 8))
    n_b_tiles = _cdiv(B_pad, b_tile)
    B_pad = n_b_tiles * b_tile

    # Generation-aware VMEM budget; shrink chunk_t until the tiles fit.
    try:
        vmem_cap = pltpu.get_tpu_info().vmem_capacity_bytes
    except Exception:
        vmem_cap = 64 << 20                      # conservative (v7x per-core VMEM)
    vmem_budget = vmem_cap * 3 // 4
    dt_bytes = jnp.dtype(mxu_dtype).itemsize

    def _vmem_est(ct):
        return (2 * ct * b_tile * E_pad * dt_bytes            # double-buffered x blocks
                + 2 * ct * b_tile * 3 * H_pad * 4             # 2-slot gi scratch (f32)
                + 2 * (E_pad + H_pad) * 3 * H_pad * dt_bytes  # weights (double-buffered)
                + 2 * b_tile * H_pad * 4                      # resident output block
                + 4 * 3 * H_pad * 4 + (1 << 20))              # biases + slack

    chunk_t = max(1, min(chunk_t, T))
    while chunk_t > 8 and _vmem_est(chunk_t) > vmem_budget:
        chunk_t = max(8, chunk_t // 2)
    n_chunks = _cdiv(T, chunk_t)
    T_pad = n_chunks * chunk_t
    last_chunk_steps = T - (n_chunks - 1) * chunk_t           # static trip count

    vmem_limit = int(min(vmem_budget, max(2 * _vmem_est(chunk_t), 32 << 20)))

    # Full unroll while vreg pressure is low; partial unroll once the per-step gi/gh
    # working set gets large (avoid spill-bound unrolled loops).
    step_live_bytes = b_tile * 3 * H_pad * 4
    unroll = True if (step_live_bytes <= (128 << 10) and chunk_t <= 32) else 8

    # Glue: time-major embedding gather + zero padding (padded steps are never iterated).
    x = jnp.take(embedding_table, jnp.transpose(token_ids), axis=0)     # (T, B, E)
    x = jnp.pad(x.astype(mxu_dtype),
                ((0, T_pad - T), (0, B_pad - B), (0, E_pad - E)))        # (T_pad,B_pad,E_pad)

    # Weights packed so each gate occupies a 128-lane-aligned, zero-padded column block.
    w_ih_p = _pack_gate_matrix(w_ih, E, E_pad, H, H_pad, mxu_dtype)      # (E_pad, 3*H_pad)
    w_hh_p = _pack_gate_matrix(w_hh, H, H_pad, H, H_pad, mxu_dtype)      # (H_pad, 3*H_pad)
    b_ih_p = _pack_gate_bias(b_ih, H, H_pad)                             # (1, 3*H_pad)
    b_hh_p = _pack_gate_bias(b_hh, H, H_pad)

    kernel = functools.partial(gru_kernel, n_chunks=n_chunks, chunk_t=chunk_t,
                               last_chunk_steps=last_chunk_steps, unroll=unroll)

    h_full = pl.pallas_call(
        kernel,
        out_shape=jax.ShapeDtypeStruct((B_pad, H_pad), jnp.float32),
        grid_spec=pltpu.PrefetchScalarGridSpec(
            num_scalar_prefetch=0,
            # Skewed pipeline: one extra step on the time axis drains the last chunk.
            grid=(n_b_tiles, n_chunks + 1),
            in_specs=[
                pl.BlockSpec((chunk_t, b_tile, E_pad),
                             lambda b, c: (jnp.minimum(c, n_chunks - 1), b, 0)),
                pl.BlockSpec((E_pad, 3 * H_pad), lambda b, c: (0, 0)),
                pl.BlockSpec((H_pad, 3 * H_pad), lambda b, c: (0, 0)),
                pl.BlockSpec((1, 3 * H_pad), lambda b, c: (0, 0)),
                pl.BlockSpec((1, 3 * H_pad), lambda b, c: (0, 0)),
            ],
            # Constant block index across c -> hidden state stays resident in VMEM.
            out_specs=pl.BlockSpec((b_tile, H_pad), lambda b, c: (b, 0)),
            scratch_shapes=[
                pltpu.VMEM((2, chunk_t, b_tile, 3 * H_pad), jnp.float32),
            ],
        ),
        compiler_params=pltpu.CompilerParams(
            # Batch tiles are independent (megacore); time recurrence is serial.
            dimension_semantics=("parallel", "arbitrary"),
            vmem_limit_bytes=vmem_limit,
        ),
    )(x, w_ih_p, w_hh_p, b_ih_p, b_hh_p)

    return h_full[:B, :H]


def reference_forward(token_ids, embedding_table, w_ih, w_hh, b_ih, b_hh):
    """Pure-JAX reference of PyTorch's nn.GRU final hidden state."""
    H = w_hh.shape[1]
    x = jnp.take(embedding_table, token_ids, axis=0)  # (B, T, E)
    B, T, _ = x.shape
    h = jnp.zeros((B, H), jnp.float32)
    for t in range(T):
        gi = x[:, t, :] @ w_ih.T + b_ih
        gh = h @ w_hh.T + b_hh
        i_r, i_z, i_n = gi[:, :H], gi[:, H:2 * H], gi[:, 2 * H:]
        h_r, h_z, h_n = gh[:, :H], gh[:, H:2 * H], gh[:, 2 * H:]
        r = jax.nn.sigmoid(i_r + h_r)
        z = jax.nn.sigmoid(i_z + h_z)
        n = jnp.tanh(i_n + r * h_n)
        h = (1.0 - z) * n + z * h
    return h


if __name__ == "__main__":
    # Small, self-consistent shapes.
    VOCAB = 50          # synthetic stand-in for model_wiki.vectors rows
    E = 32              # embedding_dim
    H = 32              # hidden_dim
    B = 2               # batch
    T = 8               # sequence length

    key = jax.random.PRNGKey(0)
    k_emb, k_wih, k_whh, k_bih, k_bhh, k_tok = jax.random.split(key, 6)

    # Deterministic parameter init (synthetic; stands in for pretrained vectors).
    embedding_table = jax.random.normal(k_emb, (VOCAB, E), jnp.float32) * 0.1
    w_ih = jax.random.normal(k_wih, (3 * H, E), jnp.float32) * 0.1   # PyTorch weight_ih_l0
    w_hh = jax.random.normal(k_whh, (3 * H, H), jnp.float32) * 0.1   # PyTorch weight_hh_l0
    b_ih = jax.random.normal(k_bih, (3 * H,), jnp.float32) * 0.1
    b_hh = jax.random.normal(k_bhh, (3 * H,), jnp.float32) * 0.1

    token_ids = jax.random.randint(k_tok, (B, T), 0, VOCAB, dtype=jnp.int32)

    ref = reference_forward(token_ids, embedding_table, w_ih, w_hh, b_ih, b_hh)

    # 1) f32 operands, chunk_t=3 -> 3 chunks with a partial last chunk: exercises the
    #    skewed phase-1/phase-2 pipeline, slot toggling, and the static-trip-count tail.
    out_f32 = tower_d_forward(token_ids, embedding_table, w_ih, w_hh, b_ih, b_hh,
                              chunk_t=3, mxu_dtype=jnp.float32)
    out_f32 = jax.block_until_ready(out_f32)
    assert out_f32.shape == (B, H)
    assert jnp.allclose(out_f32, ref, atol=1e-4, rtol=1e-4), \
        float(jnp.max(jnp.abs(out_f32 - ref)))

    # 2) Defaults (bf16 MXU operands, auto chunk sizing): looser tolerance because the
    #    hidden state is re-quantized to bf16 for each h @ W_hh.
    out_bf16 = tower_d_forward(token_ids, embedding_table, w_ih, w_hh, b_ih, b_hh)
    out_bf16 = jax.block_until_ready(out_bf16)
    assert out_bf16.shape == (B, H)
    assert jnp.allclose(out_bf16, ref, atol=3e-2, rtol=3e-2), \
        float(jnp.max(jnp.abs(out_bf16 - ref)))

    print("KERNEL_OK")
</pallas_src>

<mosaic_0001>
module attributes {stable_mosaic.version = 11 : i64} {
  func.func @gru_kernel(%arg0: i32, %arg1: i32, %arg2: memref<3x8x128xf32, #tpu.memory_space<vmem>>, %arg3: memref<128x384xf32, #tpu.memory_space<vmem>>, %arg4: memref<128x384xf32, #tpu.memory_space<vmem>>, %arg5: memref<1x384xf32, #tpu.memory_space<vmem>>, %arg6: memref<1x384xf32, #tpu.memory_space<vmem>>, %arg7: memref<8x128xf32, #tpu.memory_space<vmem>>, %arg8: memref<2x3x8x384xf32, #tpu.memory_space<vmem>>) attributes {dimension_semantics = [#tpu.dimension_semantics<parallel>, #tpu.dimension_semantics<arbitrary>], iteration_bounds = array<i64: 1, 4>, scalar_prefetch = 0 : i64, scratch_operands = 1 : i64, tpu.core_type = #tpu.core_type<tc>, window_params = [{transform_indices = @transform_0, window_bounds = array<i64: 3, 8, 128>}, {pipeline_mode = #tpu.pipeline_mode<synchronous>, transform_indices = @transform_1, window_bounds = array<i64: 128, 384>}, {pipeline_mode = #tpu.pipeline_mode<synchronous>, transform_indices = @transform_2, window_bounds = array<i64: 128, 384>}, {pipeline_mode = #tpu.pipeline_mode<synchronous>, transform_indices = @transform_3, window_bounds = array<i64: 1, 384>}, {pipeline_mode = #tpu.pipeline_mode<synchronous>, transform_indices = @transform_4, window_bounds = array<i64: 1, 384>}, {transform_indices = @transform_5, window_bounds = array<i64: 8, 128>}]} {
    %c0_i32 = arith.constant 0 : i32
    %0 = arith.cmpi eq, %arg1, %c0_i32 : i32
    %1 = arith.extui %0 : i1 to i32
    %c0_i32_0 = arith.constant 0 : i32
    %2 = arith.cmpi ne, %1, %c0_i32_0 : i32
    scf.if %2 {
      %cst = arith.constant 0.000000e+00 : f32
      %9 = vector.broadcast %cst : f32 to vector<8x128xf32>
      %c0 = arith.constant 0 : index
      %c0_4 = arith.constant 0 : index
      %10 = vector.load %arg7[%c0, %c0_4] : memref<8x128xf32, #tpu.memory_space<vmem>>, vector<8x128xf32>
      tpu.vector_store %arg7[%c0, %c0_4], %9 {strides = array<i32>} : memref<8x128xf32, #tpu.memory_space<vmem>>, vector<8x128xf32>,
    } else {
    }
    %c3_i32 = arith.constant 3 : i32
    %3 = arith.cmpi slt, %arg1, %c3_i32 : i32
    %4 = arith.extui %3 : i1 to i32
    %c0_i32_1 = arith.constant 0 : i32
    %5 = arith.cmpi ne, %4, %c0_i32_1 : i32
    scf.if %5 {
      %c0 = arith.constant 0 : index
      %c0_4 = arith.constant 0 : index
      %c0_5 = arith.constant 0 : index
      %9 = vector.load %arg2[%c0, %c0_4, %c0_5] : memref<3x8x128xf32, #tpu.memory_space<vmem>>, vector<3x8x128xf32>
      %10 = vector.shape_cast %9 : vector<3x8x128xf32> to vector<24x128xf32>
      %c0_6 = arith.constant 0 : index
      %c0_7 = arith.constant 0 : index
      %11 = vector.load %arg3[%c0_6, %c0_7] : memref<128x384xf32, #tpu.memory_space<vmem>>, vector<128x384xf32>
      %cst = arith.constant dense<0.000000e+00> : vector<24x384xf32>
      %12 = tpu.matmul %10, %11, %cst {dimension_numbers = #tpu.dot_dimension_numbers<[1], [0], [0], [1], [0, 0, 1, 1], [], []>} : vector<24x128xf32>, vector<128x384xf32>, vector<24x384xf32> -> vector<24x384xf32>
      %c0_8 = arith.constant 0 : index
      %c0_9 = arith.constant 0 : index
      %13 = vector.load %arg5[%c0_8, %c0_9] : memref<1x384xf32, #tpu.memory_space<vmem>>, vector<1x384xf32>
      %14 = vector.broadcast %13 : vector<1x384xf32> to vector<24x384xf32>
      %15 = arith.addf %12, %14 : vector<24x384xf32>
      %16 = vector.shape_cast %15 : vector<24x384xf32> to vector<3x8x384xf32>
      %c1_i32 = arith.constant 1 : i32
      %17 = arith.andi %arg1, %c1_i32 : i32
      %18 = arith.index_cast %17 : i32 to index
      %c0_10 = arith.constant 0 : index
      %c0_11 = arith.constant 0 : index
      %c0_12 = arith.constant 0 : index
      %19 = vector.load %arg8[%18, %c0_10, %c0_11, %c0_12] : memref<2x3x8x384xf32, #tpu.memory_space<vmem>>, vector<1x3x8x384xf32>
      %20 = vector.shape_cast %19 : vector<1x3x8x384xf32> to vector<3x8x384xf32>
      %21 = vector.shape_cast %16 : vector<3x8x384xf32> to vector<1x3x8x384xf32>
      tpu.vector_store %arg8[%18, %c0_10, %c0_11, %c0_12], %21 {strides = array<i32>} : memref<2x3x8x384xf32, #tpu.memory_space<vmem>>, vector<1x3x8x384xf32>,
    } else {
    }
    %c0_i32_2 = arith.constant 0 : i32
    %6 = arith.cmpi sgt, %arg1, %c0_i32_2 : i32
    %7 = arith.extui %6 : i1 to i32
    %c0_i32_3 = arith.constant 0 : i32
    %8 = arith.cmpi ne, %7, %c0_i32_3 : i32
    scf.if %8 {
      %c1_i32 = arith.constant 1 : i32
      %9 = arith.addi %arg1, %c1_i32 : i32
      %c1_i32_4 = arith.constant 1 : i32
      %10 = arith.andi %9, %c1_i32_4 : i32
      %c0 = arith.constant 0 : index
      %c0_5 = arith.constant 0 : index
      %11 = vector.load %arg4[%c0, %c0_5] : memref<128x384xf32, #tpu.memory_space<vmem>>, vector<128x384xf32>
      %c0_6 = arith.constant 0 : index
      %c0_7 = arith.constant 0 : index
      %12 = vector.load %arg6[%c0_6, %c0_7] : memref<1x384xf32, #tpu.memory_space<vmem>>, vector<1x384xf32>
      %c0_8 = arith.constant 0 : index
      %c0_9 = arith.constant 0 : index
      %13 = vector.load %arg7[%c0_8, %c0_9] : memref<8x128xf32, #tpu.memory_space<vmem>>, vector<8x128xf32>
      %c3_i32_10 = arith.constant 3 : i32
      %14 = arith.cmpi slt, %arg1, %c3_i32_10 : i32
      %15 = arith.extui %14 : i1 to i32
      %c0_i32_11 = arith.constant 0 : i32
      %16 = arith.cmpi ne, %15, %c0_i32_11 : i32
      scf.if %16 {
        %c0_i32_14 = arith.constant 0 : i32
        %20 = arith.index_cast %10 : i32 to index
        %21 = arith.index_cast %c0_i32_14 : i32 to index
        %c0_15 = arith.constant 0 : index
        %c0_16 = arith.constant 0 : index
        %22 = vector.load %arg8[%20, %21, %c0_15, %c0_16] : memref<2x3x8x384xf32, #tpu.memory_space<vmem>>, vector<1x1x8x384xf32>
        %23 = vector.shape_cast %22 : vector<1x1x8x384xf32> to vector<8x384xf32>
        %cst = arith.constant dense<0.000000e+00> : vector<8x384xf32>
        %24 = tpu.matmul %13, %11, %cst {dimension_numbers = #tpu.dot_dimension_numbers<[1], [0], [0], [1], [0, 0, 1, 1], [], []>} : vector<8x128xf32>, vector<128x384xf32>, vector<8x384xf32> -> vector<8x384xf32>
        %25 = vector.broadcast %12 : vector<1x384xf32> to vector<8x384xf32>
        %26 = arith.addf %24, %25 : vector<8x384xf32>
        %27 = vector.extract_strided_slice %23 {offsets = [0, 0], sizes = [8, 128], strides = [1, 1]} : vector<8x384xf32> to vector<8x128xf32>
        %28 = vector.extract_strided_slice %26 {offsets = [0, 0], sizes = [8, 128], strides = [1, 1]} : vector<8x384xf32> to vector<8x128xf32>
        %29 = arith.addf %27, %28 : vector<8x128xf32>
        %30 = arith.negf %29 : vector<8x128xf32>
        %31 = math.exp %30 : vector<8x128xf32>
        %cst_17 = arith.constant 1.000000e+00 : f32
        %32 = vector.broadcast %cst_17 : f32 to vector<8x128xf32>
        %33 = arith.addf %32, %31 : vector<8x128xf32>
        %34 = arith.divf %32, %33 : vector<8x128xf32>
        %35 = vector.extract_strided_slice %23 {offsets = [0, 128], sizes = [8, 128], strides = [1, 1]} : vector<8x384xf32> to vector<8x128xf32>
        %36 = vector.extract_strided_slice %26 {offsets = [0, 128], sizes = [8, 128], strides = [1, 1]} : vector<8x384xf32> to vector<8x128xf32>
        %37 = arith.addf %35, %36 : vector<8x128xf32>
        %38 = arith.negf %37 : vector<8x128xf32>
        %39 = math.exp %38 : vector<8x128xf32>
        %cst_18 = arith.constant 1.000000e+00 : f32
        %40 = vector.broadcast %cst_18 : f32 to vector<8x128xf32>
        %41 = arith.addf %40, %39 : vector<8x128xf32>
        %42 = arith.divf %40, %41 : vector<8x128xf32>
        %43 = vector.extract_strided_slice %23 {offsets = [0, 256], sizes = [8, 128], strides = [1, 1]} : vector<8x384xf32> to vector<8x128xf32>
        %44 = vector.extract_strided_slice %26 {offsets = [0, 256], sizes = [8, 128], strides = [1, 1]} : vector<8x384xf32> to vector<8x128xf32>
        %45 = arith.mulf %34, %44 : vector<8x128xf32>
        %46 = arith.addf %43, %45 : vector<8x128xf32>
        %47 = math.tanh %46 : vector<8x128xf32>
        %cst_19 = arith.constant 1.000000e+00 : f32
        %48 = vector.broadcast %cst_19 : f32 to vector<8x128xf32>
        %49 = arith.subf %48, %42 : vector<8x128xf32>
        %50 = arith.mulf %49, %47 : vector<8x128xf32>
        %51 = arith.mulf %42, %13 : vector<8x128xf32>
        %52 = arith.addf %50, %51 : vector<8x128xf32>
        %c1_i32_20 = arith.constant 1 : i32
        %53 = arith.index_cast %10 : i32 to index
        %54 = arith.index_cast %c1_i32_20 : i32 to index
        %c0_21 = arith.constant 0 : index
        %c0_22 = arith.constant 0 : index
        %55 = vector.load %arg8[%53, %54, %c0_21, %c0_22] : memref<2x3x8x384xf32, #tpu.memory_space<vmem>>, vector<1x1x8x384xf32>
        %56 = vector.shape_cast %55 : vector<1x1x8x384xf32> to vector<8x384xf32>
        %cst_23 = arith.constant dense<0.000000e+00> : vector<8x384xf32>
        %57 = tpu.matmul %52, %11, %cst_23 {dimension_numbers = #tpu.dot_dimension_numbers<[1], [0], [0], [1], [0, 0, 1, 1], [], []>} : vector<8x128xf32>, vector<128x384xf32>, vector<8x384xf32> -> vector<8x384xf32>
        %58 = vector.broadcast %12 : vector<1x384xf32> to vector<8x384xf32>
        %59 = arith.addf %57, %58 : vector<8x384xf32>
        %60 = vector.extract_strided_slice %56 {offsets = [0, 0], sizes = [8, 128], strides = [1, 1]} : vector<8x384xf32> to vector<8x128xf32>
        %61 = vector.extract_strided_slice %59 {offsets = [0, 0], sizes = [8, 128], strides = [1, 1]} : vector<8x384xf32> to vector<8x128xf32>
        %62 = arith.addf %60, %61 : vector<8x128xf32>
        %63 = arith.negf %62 : vector<8x128xf32>
        %64 = math.exp %63 : vector<8x128xf32>
        %cst_24 = arith.constant 1.000000e+00 : f32
        %65 = vector.broadcast %cst_24 : f32 to vector<8x128xf32>
        %66 = arith.addf %65, %64 : vector<8x128xf32>
        %67 = arith.divf %65, %66 : vector<8x128xf32>
        %68 = vector.extract_strided_slice %56 {offsets = [0, 128], sizes = [8, 128], strides = [1, 1]} : vector<8x384xf32> to vector<8x128xf32>
        %69 = vector.extract_strided_slice %59 {offsets = [0, 128], sizes = [8, 128], strides = [1, 1]} : vector<8x384xf32> to vector<8x128xf32>
        %70 = arith.addf %68, %69 : vector<8x128xf32>
        %71 = arith.negf %70 : vector<8x128xf32>
        %72 = math.exp %71 : vector<8x128xf32>
        %cst_25 = arith.constant 1.000000e+00 : f32
        %73 = vector.broadcast %cst_25 : f32 to vector<8x128xf32>
        %74 = arith.addf %73, %72 : vector<8x128xf32>
        %75 = arith.divf %73, %74 : vector<8x128xf32>
        %76 = vector.extract_strided_slice %56 {offsets = [0, 256], sizes = [8, 128], strides = [1, 1]} : vector<8x384xf32> to vector<8x128xf32>
        %77 = vector.extract_strided_slice %59 {offsets = [0, 256], sizes = [8, 128], strides = [1, 1]} : vector<8x384xf32> to vector<8x128xf32>
        %78 = arith.mulf %67, %77 : vector<8x128xf32>
        %79 = arith.addf %76, %78 : vector<8x128xf32>
        %80 = math.tanh %79 : vector<8x128xf32>
        %cst_26 = arith.constant 1.000000e+00 : f32
        %81 = vector.broadcast %cst_26 : f32 to vector<8x128xf32>
        %82 = arith.subf %81, %75 : vector<8x128xf32>
        %83 = arith.mulf %82, %80 : vector<8x128xf32>
        %84 = arith.mulf %75, %52 : vector<8x128xf32>
        %85 = arith.addf %83, %84 : vector<8x128xf32>
        %c2_i32 = arith.constant 2 : i32
        %86 = arith.index_cast %10 : i32 to index
        %87 = arith.index_cast %c2_i32 : i32 to index
        %c0_27 = arith.constant 0 : index
        %c0_28 = arith.constant 0 : index
        %88 = vector.load %arg8[%86, %87, %c0_27, %c0_28] : memref<2x3x8x384xf32, #tpu.memory_space<vmem>>, vector<1x1x8x384xf32>
        %89 = vector.shape_cast %88 : vector<1x1x8x384xf32> to vector<8x384xf32>
        %cst_29 = arith.constant dense<0.000000e+00> : vector<8x384xf32>
        %90 = tpu.matmul %85, %11, %cst_29 {dimension_numbers = #tpu.dot_dimension_numbers<[1], [0], [0], [1], [0, 0, 1, 1], [], []>} : vector<8x128xf32>, vector<128x384xf32>, vector<8x384xf32> -> vector<8x384xf32>
        %91 = vector.broadcast %12 : vector<1x384xf32> to vector<8x384xf32>
        %92 = arith.addf %90, %91 : vector<8x384xf32>
        %93 = vector.extract_strided_slice %89 {offsets = [0, 0], sizes = [8, 128], strides = [1, 1]} : vector<8x384xf32> to vector<8x128xf32>
        %94 = vector.extract_strided_slice %92 {offsets = [0, 0], sizes = [8, 128], strides = [1, 1]} : vector<8x384xf32> to vector<8x128xf32>
        %95 = arith.addf %93, %94 : vector<8x128xf32>
        %96 = arith.negf %95 : vector<8x128xf32>
        %97 = math.exp %96 : vector<8x128xf32>
        %cst_30 = arith.constant 1.000000e+00 : f32
        %98 = vector.broadcast %cst_30 : f32 to vector<8x128xf32>
        %99 = arith.addf %98, %97 : vector<8x128xf32>
        %100 = arith.divf %98, %99 : vector<8x128xf32>
        %101 = vector.extract_strided_slice %89 {offsets = [0, 128], sizes = [8, 128], strides = [1, 1]} : vector<8x384xf32> to vector<8x128xf32>
        %102 = vector.extract_strided_slice %92 {offsets = [0, 128], sizes = [8, 128], strides = [1, 1]} : vector<8x384xf32> to vector<8x128xf32>
        %103 = arith.addf %101, %102 : vector<8x128xf32>
        %104 = arith.negf %103 : vector<8x128xf32>
        %105 = math.exp %104 : vector<8x128xf32>
        %cst_31 = arith.constant 1.000000e+00 : f32
        %106 = vector.broadcast %cst_31 : f32 to vector<8x128xf32>
        %107 = arith.addf %106, %105 : vector<8x128xf32>
        %108 = arith.divf %106, %107 : vector<8x128xf32>
        %109 = vector.extract_strided_slice %89 {offsets = [0, 256], sizes = [8, 128], strides = [1, 1]} : vector<8x384xf32> to vector<8x128xf32>
        %110 = vector.extract_strided_slice %92 {offsets = [0, 256], sizes = [8, 128], strides = [1, 1]} : vector<8x384xf32> to vector<8x128xf32>
        %111 = arith.mulf %100, %110 : vector<8x128xf32>
        %112 = arith.addf %109, %111 : vector<8x128xf32>
        %113 = math.tanh %112 : vector<8x128xf32>
        %cst_32 = arith.constant 1.000000e+00 : f32
        %114 = vector.broadcast %cst_32 : f32 to vector<8x128xf32>
        %115 = arith.subf %114, %108 : vector<8x128xf32>
        %116 = arith.mulf %115, %113 : vector<8x128xf32>
        %117 = arith.mulf %108, %85 : vector<8x128xf32>
        %118 = arith.addf %116, %117 : vector<8x128xf32>
        %c3_i32_33 = arith.constant 3 : i32
        %c0_34 = arith.constant 0 : index
        %c0_35 = arith.constant 0 : index
        %119 = vector.load %arg7[%c0_34, %c0_35] : memref<8x128xf32, #tpu.memory_space<vmem>>, vector<8x128xf32>
        tpu.vector_store %arg7[%c0_34, %c0_35], %118 {strides = array<i32>} : memref<8x128xf32, #tpu.memory_space<vmem>>, vector<8x128xf32>,
      } else {
      }
      %c3_i32_12 = arith.constant 3 : i32
      %17 = arith.cmpi eq, %arg1, %c3_i32_12 : i32
      %18 = arith.extui %17 : i1 to i32
      %c0_i32_13 = arith.constant 0 : i32
      %19 = arith.cmpi ne, %18, %c0_i32_13 : i32
      scf.if %19 {
        %c0_i32_14 = arith.constant 0 : i32
        %20 = arith.index_cast %10 : i32 to index
        %21 = arith.index_cast %c0_i32_14 : i32 to index
        %c0_15 = arith.constant 0 : index
        %c0_16 = arith.constant 0 : index
        %22 = vector.load %arg8[%20, %21, %c0_15, %c0_16] : memref<2x3x8x384xf32, #tpu.memory_space<vmem>>, vector<1x1x8x384xf32>
        %23 = vector.shape_cast %22 : vector<1x1x8x384xf32> to vector<8x384xf32>
        %cst = arith.constant dense<0.000000e+00> : vector<8x384xf32>
        %24 = tpu.matmul %13, %11, %cst {dimension_numbers = #tpu.dot_dimension_numbers<[1], [0], [0], [1], [0, 0, 1, 1], [], []>} : vector<8x128xf32>, vector<128x384xf32>, vector<8x384xf32> -> vector<8x384xf32>
        %25 = vector.broadcast %12 : vector<1x384xf32> to vector<8x384xf32>
        %26 = arith.addf %24, %25 : vector<8x384xf32>
        %27 = vector.extract_strided_slice %23 {offsets = [0, 0], sizes = [8, 128], strides = [1, 1]} : vector<8x384xf32> to vector<8x128xf32>
        %28 = vector.extract_strided_slice %26 {offsets = [0, 0], sizes = [8, 128], strides = [1, 1]} : vector<8x384xf32> to vector<8x128xf32>
        %29 = arith.addf %27, %28 : vector<8x128xf32>
        %30 = arith.negf %29 : vector<8x128xf32>
        %31 = math.exp %30 : vector<8x128xf32>
        %cst_17 = arith.constant 1.000000e+00 : f32
        %32 = vector.broadcast %cst_17 : f32 to vector<8x128xf32>
        %33 = arith.addf %32, %31 : vector<8x128xf32>
        %34 = arith.divf %32, %33 : vector<8x128xf32>
        %35 = vector.extract_strided_slice %23 {offsets = [0, 128], sizes = [8, 128], strides = [1, 1]} : vector<8x384xf32> to vector<8x128xf32>
        %36 = vector.extract_strided_slice %26 {offsets = [0, 128], sizes = [8, 128], strides = [1, 1]} : vector<8x384xf32> to vector<8x128xf32>
        %37 = arith.addf %35, %36 : vector<8x128xf32>
        %38 = arith.negf %37 : vector<8x128xf32>
        %39 = math.exp %38 : vector<8x128xf32>
        %cst_18 = arith.constant 1.000000e+00 : f32
        %40 = vector.broadcast %cst_18 : f32 to vector<8x128xf32>
        %41 = arith.addf %40, %39 : vector<8x128xf32>
        %42 = arith.divf %40, %41 : vector<8x128xf32>
        %43 = vector.extract_strided_slice %23 {offsets = [0, 256], sizes = [8, 128], strides = [1, 1]} : vector<8x384xf32> to vector<8x128xf32>
        %44 = vector.extract_strided_slice %26 {offsets = [0, 256], sizes = [8, 128], strides = [1, 1]} : vector<8x384xf32> to vector<8x128xf32>
        %45 = arith.mulf %34, %44 : vector<8x128xf32>
        %46 = arith.addf %43, %45 : vector<8x128xf32>
        %47 = math.tanh %46 : vector<8x128xf32>
        %cst_19 = arith.constant 1.000000e+00 : f32
        %48 = vector.broadcast %cst_19 : f32 to vector<8x128xf32>
        %49 = arith.subf %48, %42 : vector<8x128xf32>
        %50 = arith.mulf %49, %47 : vector<8x128xf32>
        %51 = arith.mulf %42, %13 : vector<8x128xf32>
        %52 = arith.addf %50, %51 : vector<8x128xf32>
        %c1_i32_20 = arith.constant 1 : i32
        %53 = arith.index_cast %10 : i32 to index
        %54 = arith.index_cast %c1_i32_20 : i32 to index
        %c0_21 = arith.constant 0 : index
        %c0_22 = arith.constant 0 : index
        %55 = vector.load %arg8[%53, %54, %c0_21, %c0_22] : memref<2x3x8x384xf32, #tpu.memory_space<vmem>>, vector<1x1x8x384xf32>
        %56 = vector.shape_cast %55 : vector<1x1x8x384xf32> to vector<8x384xf32>
        %cst_23 = arith.constant dense<0.000000e+00> : vector<8x384xf32>
        %57 = tpu.matmul %52, %11, %cst_23 {dimension_numbers = #tpu.dot_dimension_numbers<[1], [0], [0], [1], [0, 0, 1, 1], [], []>} : vector<8x128xf32>, vector<128x384xf32>, vector<8x384xf32> -> vector<8x384xf32>
        %58 = vector.broadcast %12 : vector<1x384xf32> to vector<8x384xf32>
        %59 = arith.addf %57, %58 : vector<8x384xf32>
        %60 = vector.extract_strided_slice %56 {offsets = [0, 0], sizes = [8, 128], strides = [1, 1]} : vector<8x384xf32> to vector<8x128xf32>
        %61 = vector.extract_strided_slice %59 {offsets = [0, 0], sizes = [8, 128], strides = [1, 1]} : vector<8x384xf32> to vector<8x128xf32>
        %62 = arith.addf %60, %61 : vector<8x128xf32>
        %63 = arith.negf %62 : vector<8x128xf32>
        %64 = math.exp %63 : vector<8x128xf32>
        %cst_24 = arith.constant 1.000000e+00 : f32
        %65 = vector.broadcast %cst_24 : f32 to vector<8x128xf32>
        %66 = arith.addf %65, %64 : vector<8x128xf32>
        %67 = arith.divf %65, %66 : vector<8x128xf32>
        %68 = vector.extract_strided_slice %56 {offsets = [0, 128], sizes = [8, 128], strides = [1, 1]} : vector<8x384xf32> to vector<8x128xf32>
        %69 = vector.extract_strided_slice %59 {offsets = [0, 128], sizes = [8, 128], strides = [1, 1]} : vector<8x384xf32> to vector<8x128xf32>
        %70 = arith.addf %68, %69 : vector<8x128xf32>
        %71 = arith.negf %70 : vector<8x128xf32>
        %72 = math.exp %71 : vector<8x128xf32>
        %cst_25 = arith.constant 1.000000e+00 : f32
        %73 = vector.broadcast %cst_25 : f32 to vector<8x128xf32>
        %74 = arith.addf %73, %72 : vector<8x128xf32>
        %75 = arith.divf %73, %74 : vector<8x128xf32>
        %76 = vector.extract_strided_slice %56 {offsets = [0, 256], sizes = [8, 128], strides = [1, 1]} : vector<8x384xf32> to vector<8x128xf32>
        %77 = vector.extract_strided_slice %59 {offsets = [0, 256], sizes = [8, 128], strides = [1, 1]} : vector<8x384xf32> to vector<8x128xf32>
        %78 = arith.mulf %67, %77 : vector<8x128xf32>
        %79 = arith.addf %76, %78 : vector<8x128xf32>
        %80 = math.tanh %79 : vector<8x128xf32>
        %cst_26 = arith.constant 1.000000e+00 : f32
        %81 = vector.broadcast %cst_26 : f32 to vector<8x128xf32>
        %82 = arith.subf %81, %75 : vector<8x128xf32>
        %83 = arith.mulf %82, %80 : vector<8x128xf32>
        %84 = arith.mulf %75, %52 : vector<8x128xf32>
        %85 = arith.addf %83, %84 : vector<8x128xf32>
        %c2_i32 = arith.constant 2 : i32
        %c0_27 = arith.constant 0 : index
        %c0_28 = arith.constant 0 : index
        %86 = vector.load %arg7[%c0_27, %c0_28] : memref<8x128xf32, #tpu.memory_space<vmem>>, vector<8x128xf32>
        tpu.vector_store %arg7[%c0_27, %c0_28], %85 {strides = array<i32>} : memref<8x128xf32, #tpu.memory_space<vmem>>, vector<8x128xf32>,
      } else {
      }
    } else {
    }
    return
  }
  func.func @transform_0(%arg0: i32, %arg1: i32) -> (i32, i32, i32) {
    %c2_i32 = arith.constant 2 : i32
    %0 = arith.minsi %arg1, %c2_i32 : i32
    %c0_i32 = arith.constant 0 : i32
    %c0_i32_0 = arith.constant 0 : i32
    return %0, %arg0, %c0_i32 : i32, i32, i32
  }
  func.func @transform_1(%arg0: i32, %arg1: i32) -> (i32, i32) {
    %c0_i32 = arith.constant 0 : i32
    %c0_i32_0 = arith.constant 0 : i32
    %c0_i32_1 = arith.constant 0 : i32
    return %c0_i32, %c0_i32_0 : i32, i32
  }
  func.func @transform_2(%arg0: i32, %arg1: i32) -> (i32, i32) {
    %c0_i32 = arith.constant 0 : i32
    %c0_i32_0 = arith.constant 0 : i32
    %c0_i32_1 = arith.constant 0 : i32
    return %c0_i32, %c0_i32_0 : i32, i32
  }
  func.func @transform_3(%arg0: i32, %arg1: i32) -> (i32, i32) {
    %c0_i32 = arith.constant 0 : i32
    %c0_i32_0 = arith.constant 0 : i32
    %c0_i32_1 = arith.constant 0 : i32
    return %c0_i32, %c0_i32_0 : i32, i32
  }
  func.func @transform_4(%arg0: i32, %arg1: i32) -> (i32, i32) {
    %c0_i32 = arith.constant 0 : i32
    %c0_i32_0 = arith.constant 0 : i32
    %c0_i32_1 = arith.constant 0 : i32
    return %c0_i32, %c0_i32_0 : i32, i32
  }
  func.func @transform_5(%arg0: i32, %arg1: i32) -> (i32, i32) {
    %c0_i32 = arith.constant 0 : i32
    %c0_i32_0 = arith.constant 0 : i32
    return %arg0, %c0_i32 : i32, i32
  }
}

</mosaic_0001>

<bundles_post_ra>
// kernel: tpu_custom_call.1
= control target key start
LH: loop header
LB: loop body
LE: loop exit
PB: predicated region body
PF: predicated region fallthrough
CT: control target
= control target key end

     0   :  { %10 = vsyncpa [#allocation4], 0  ;;  %s3347_s0 = inlined_call_operand.hbm [shape: f32[9,8,128], index: 0, kind: input, shape index: {}]   ;;  %s3348_s1 = inlined_call_operand.hbm [shape: f32[128,384], index: 1, kind: input, shape index: {}]   ;;  %s3349_s2 = inlined_call_operand.hbm [shape: f32[128,384], index: 2, kind: input, shape index: {}]   ;;  %s3350_s3 = inlined_call_operand.vmem [shape: f32[1,384], index: 3, kind: input, shape index: {}]   ;;  %s3351_s4 = inlined_call_operand.vmem [shape: f32[1,384], index: 4, kind: input, shape index: {}]   ;;  %s3352_s5 = inlined_call_operand.hbm [shape: f32[8,128], index: 5, kind: output, shape index: {}]  }
   0x1   :  { %12 = vsyncpa [#allocation4 + $0x1], 0 }
   0x2   :  { %13 = vsyncpa [#allocation7], 0 }
   0x3   :  { %14 = vsyncpa [#allocation5], 0  ;;  %s2660_s18 = smov 0   ;;  %s2662_s19 = smov 0  }
   0x4   :  { %s2664_s20 = smov 0   ;;  %s2666_s21 = smov 0  }
   0x5   :  { %s2668_s22 = smov 0   ;;  %s2670_s23 = smov 0  }
   0x6 LB: > { %s1588_s24 = sadd.s32 4294967295, %s2610_s23   ;;  %p58_p0 = scmp.ne.s32.totalorder %s2594_s19, %s2590_s18  ;;  %s2610_s23 = sphi %s2670_s23, %s20_s23   ;;  %s2606_s22 = sphi %s2668_s22, %s3467_s22   ;;  %s2602_s21 = sphi %s2666_s21, %s3466_s21   ;;  %s2598_s20 = sphi %s2664_s20, %s3465_s20   ;;  %s2594_s19 = sphi %s2662_s19, %s3464_s19   ;;  %s2590_s18 = sphi %s2660_s18, %s3463_s18  }
   0x7   : > { %p2692_p1 = scmp.eq.s32.totalorder %s1588_s24, 0  ;;  %p1589_p2 = scmp.ge.s32.totalorder %s2610_s23, 1 }
   0x8   : > { %p179_p3 = scmp.lt.s32.totalorder %s2610_s23, 5  ;;  %s2612_s28 = smov [#allocation6]  }
   0x9   : > { %s3391_s25 = scalar_select %p2692_p1, 1, 0 }
   0xa   : > { %p2700_p4 = por %p2692_p1, %p58_p0  ;;  %p2704_p5 = pnand %p1589_p2, %p179_p3 }
   0xb   : > { %s191_s29 = sshll.u32 %s2612_s28, 4  ;;  %s2613_s6 = smov [#allocation8]   ;;  %s192_s29 = int_to_ptr.vmem [resolvable:$true] %s191_s29 }
   0xc   : > { %s3392_s26 = scalar_select %p2700_p4, 1, 0 }
   0xd   : > { %s3393_s27 = scalar_select %p2704_p5, 1, 0 }
   0xe   : > { %p2307_p6 = pneg %p2704_p5  ;;  %s204_s7 = sshll.u32 %s2613_s6, 4  ;;  %s2716_s7 = int_to_ptr.vmem [resolvable:$true] %s204_s7 }
   0xf   : > { %s2440_s10 = scalar_lea.hbm %s3348_s1, 6144 }
  0x10   : > { %p2712_p7 = pnand %p2307_p6, %p2692_p1  ;;  %p2441_p8 = scmp.ne.s32.totalorder %s3348_s1, %s2440_s10 }
  0x11   : > { %p2447_p12 = scmp.lt.u32.totalorder %s2440_s10, %s3348_s1 }
  0x12   : > { %p2442_p9 = pneg %p2712_p7 }
  0x14   : > { %p2443_p10 = pnand %p2442_p9, %p2441_p8 }
  0x16   : > { %p2444_p11 = pneg %p2443_p10 }
  0x18   : > { %p2449_p13 = pnand %p2447_p12, %p2444_p11 }
  0x1a   : > { %2452 = shalt.err (!%p2449_p13)
}
  0x1b   : > { %s2453_s15 = scalar_lea.vmem %s192_s29, 6144  ;;  %p2461_p6 = scmp.lt.s32.totalorder %s192_s29, %s192_s29 }
  0x1c   : > { %p2454_p0 = scmp.ne.s32.totalorder %s192_s29, %s2453_s15  ;;  %p2462_p1 = scmp.lt.s32.totalorder %s2453_s15, %s2453_s15 }
  0x1e   : > { %p2456_p2 = pnand %p2454_p0, %p2442_p9  ;;  %p2463_p4 = por %p2462_p1, %p2461_p6 }
  0x20   : > { %p2457_p3 = pneg %p2456_p2 }
  0x22   : > { %p2464_p5 = pnand %p2463_p4, %p2457_p3 }
  0x24   : > { %2467 = shalt.err (!%p2464_p5)
}
  0x25   : > { %s2614_s16 = smov 384   ;;  %s2615_s17 = smov 24  }
  0x26   : > { %2310 = dma.hbm_to_vmem [thread:$0]  (!%p2712_p7), %s3348_s1, 6144, %s192_s29, [#allocation7], %s2614_s16, %s2614_s16, %s2615_s17  }
  0x27   : > { %s2468_s9 = scalar_lea.hbm %s3349_s2, 6144 }
  0x28   : > { %p2469_p8 = scmp.ne.s32.totalorder %s3349_s2, %s2468_s9  ;;  %p2475_p5 = scmp.lt.u32.totalorder %s2468_s9, %s3349_s2 }
  0x2a   : > { %p2471_p1 = pnand %p2469_p8, %p2442_p9 }
  0x2c   : > { %p2472_p4 = pneg %p2471_p1 }
  0x2e   : > { %p2477_p10 = pnand %p2475_p5, %p2472_p4 }
  0x30   : > { %2480 = shalt.err (!%p2477_p10)
}
  0x31   : > { %s2481_s29 = scalar_lea.vmem %s2716_s7, 6144  ;;  %p2489_p0 = scmp.lt.s32.totalorder %s2716_s7, %s2716_s7 }
  0x32   : > { %p2482_p11 = scmp.ne.s32.totalorder %s2716_s7, %s2481_s29  ;;  %p2490_p2 = scmp.lt.s32.totalorder %s2481_s29, %s2481_s29 }
  0x34   : > { %p2484_p12 = pnand %p2482_p11, %p2442_p9  ;;  %p2491_p3 = por %p2490_p2, %p2489_p0 }
  0x36   : > { %p2485_p13 = pneg %p2484_p12 }
  0x38   : > { %p2492_p6 = pnand %p2491_p3, %p2485_p13 }
  0x3a   : > { %2495 = shalt.err (!%p2492_p6)
}
  0x3b   : > { %2313 = dma.hbm_to_vmem [thread:$0]  (!%p2712_p7), %s3349_s2, 6144, %s2716_s7, [#allocation7], %s2614_s16, %s2614_s16, %s2615_s17  }
  0x3c   : > { %s29_s18 = sadd.s32 1, %s2606_s22  ;;  %p36_p9 = scmp.lt.s32.totalorder %s2606_s22, 2 }
  0x3d   : > { %p30_p8 = scmp.ge.s32.totalorder %s29_s18, 4  ;;  %s45_s28 = sadd.s32 1, %s2598_s20 }
  0x3e   : > { %s37_s6 = scalar_select %p36_p9, %s2606_s22, 2 }
  0x3f   : > { %s3469_s18 = smov (%p30_p8, %s29_s18), 0  ;;  %p52_p1 = scmp.ne.s32.totalorder %s2598_s20, %s2594_s19 }
  0x40   : > { %p53_p4 = scmp.eq.s32.totalorder %s2610_s23, 0  ;;  %p38_p5 = scmp.lt.s32.totalorder %s3469_s18, 2 }
  0x41   : > { %p2320_p10 = scmp.lt.s32.totalorder %s2610_s23, 4  ;;  %s224_s30 = sand.u32 1, %s2598_s20  }
  0x42   : > { %p54_p11 = por %p53_p4, %p52_p1  ;;  %s2291_s9 = smul.u32 24, %s224_s30 }
  0x43   : > { %s39_s8 = scalar_select %p38_p5, %s3469_s18, 2 }
  0x44   : > { %s1631_s16 = smul.u32 384, %s37_s6  ;;  %s228_s12 = scalar_lea.vmem [#allocation3], %s2291_s9 }
  0x45   : > { %s40_s7 = ssub.s32 %s37_s6, %s39_s8  ;;  %s238_s13 = sshll.u32 %s228_s12, 4  ;;  %s2786_s13 = int_to_ptr.vmem [resolvable:$true] %s238_s13 }
  0x46   : > { %p43_p7 = scmp.eq.s32.totalorder %s40_s7, 0  ;;  %s2781_s11 = scalar_lea.hbm %s3347_s0, %s1631_s16 }
  0x47   : > { %p2790_p12 = pnand %p2320_p10, %p54_p11  ;;  %s2794_s15 = scalar_lea.sflag [#allocation4], %s224_s30 }
  0x48   : > { %s2784_s29 = scalar_select %p43_p7, %s2598_s20, %s45_s28  }
  0x49   : > { %s2496_s6 = scalar_lea.hbm %s2781_s11, 384  ;;  %p2498_p0 = pneg %p2790_p12 }
  0x4a   : > { %p2497_p13 = scmp.ne.s32.totalorder %s2781_s11, %s2496_s6  ;;  %s2501_s9 = scalar_lea.hbm %s3347_s0, 1152 }
  0x4b   : > { %p2502_p6 = scmp.lt.u32.totalorder %s2781_s11, %s3347_s0  ;;  %p2503_p9 = scmp.lt.u32.totalorder %s2501_s9, %s2496_s6 }
  0x4c   : > { %p2499_p2 = pnand %p2498_p0, %p2497_p13  ;;  %p2505_p1 = scmp.lt.u32.totalorder %s2496_s6, %s2781_s11 }
  0x4d   : > { %p2504_p8 = por %p2503_p9, %p2502_p6 }
  0x4e   : > { %p2500_p3 = pneg %p2499_p2 }
  0x4f   : > { %p2506_p4 = por %p2505_p1, %p2504_p8 }
  0x51   : > { %p2507_p5 = pnand %p2506_p4, %p2500_p3 }
  0x53   : > { %2510 = shalt.err (!%p2507_p5)
}
  0x54   : > { %s2511_s30 = scalar_lea.vmem %s2786_s13, 384  ;;  %s2616_s17 = smov [#allocation3]  }
  0x55   : > { %p2512_p10 = scmp.ne.s32.totalorder %s2786_s13, %s2511_s30  ;;  %s2516_s10 = sshll.u32 %s2616_s17, 4  ;;  %s2517_s10 = int_to_ptr.vmem [resolvable:$false] %s2516_s10 }
  0x56   : > { %s2518_s12 = scalar_lea.vmem %s2517_s10, 768  ;;  %p2519_p13 = scmp.lt.s32.totalorder %s2786_s13, %s2517_s10 }
  0x57   : > { %p2514_p11 = pnand %p2512_p10, %p2498_p0  ;;  %p2520_p2 = scmp.lt.s32.totalorder %s2518_s12, %s2511_s30 }
  0x59   : > { %p2515_p7 = pneg %p2514_p11  ;;  %p2521_p6 = por %p2520_p2, %p2519_p13 }
  0x5b   : > { %p2522_p9 = pnand %p2521_p6, %p2515_p7 }
  0x5d   : > { %2525 = shalt.err (!%p2522_p9)
}
  0x5e   : > { %s2617_s6 = smov 128   ;;  %s2618_s28 = smov 8  }
  0x5f   : > { %2317 = dma.hbm_to_vmem [thread:$0]  (!%p2790_p12), %s2781_s11, 384, %s2786_s13, %s2794_s15, %s2617_s6, %s2617_s6, %s2618_s28  }
  0x60   : > { %p3396_p0 = scmp.ne.s32.totalorder %s3393_s27, 0 }
  0x61   : > { %s252_s8 = sand.u32 (!%p3396_p0), 1, %s2594_s19   ;;  %p3397_p3 = scmp.ne.s32.totalorder (!%p3396_p0), %s3392_s26, 0 }
  0x62   : > { %250 = sbr.rel (%p3396_p0) target bundleno = 1790 (0x6fe), region = 40  ;;  %s253_s7 = scalar_lea.sflag (!%p3396_p0), [#allocation4], %s252_s8 }
  0x63   : > { %s2292_s9 = smul.u32 (!%p3396_p0), 24, %s252_s8 }
  0x65   : > { %s2825_s16 = scalar_lea.vmem (!%p3396_p0), [#allocation3], %s2292_s9 }
  0x69   : > { %2577 = dma.done.wait (%p3397_p3), %s253_s7, 384  }
  0x6a   : > { %2579 = vsyncadd (%p3397_p3), %s253_s7, 4294966912  ;;  %p3398_p8 = scmp.ne.s32.totalorder %s3391_s25, 0 }
  0x6c   : > { %2581 = dma.done.wait (%p3398_p8), [#allocation7], 12288  }
  0x6d   : > { %2583 = vsyncadd (%p3398_p8), [#allocation7], 4294955008  ;;  %p1597_p12 = scmp.ne.s32.totalorder %s2602_s21, 0 }
  0x6e   : > { %v2619_v0 = vmov (!%p1597_p12), 0.0  }
  0x6f   : > { %292 = sbr.rel (%p1597_p12) target bundleno = 118 (0x76), region = 56  ;;  %293 = vst [vmem:[#allocation9] sm:$0xff] (!%p1597_p12), %v2619_v0 }
  0x76 PF: > { %p1598_p1 = scmp.ge.s32.totalorder %s2602_s21, 3 }
  0x77   : > { %v302_v1 = vld [vmem:[#allocation6 + $0x8] sm:$0xff] (!%p1598_p1)  ;;  %v305_v2 = vld [vmem:[#allocation6 + $0x20] sm:$0xff] (!%p1598_p1)  ;;  %v2620_v5 = vmov (!%p1598_p1), 0.0|0.0   ;;  %v304_v6 = vld [vmem:[#allocation6 + $0x18] sm:$0xff] (!%p1598_p1)  ;;  %v2621_v9 = vmov (!%p1598_p1), 0.0   ;;  %vm2622_vm0 = vmmov (!%p1598_p1), 0  }
  0x78   : > { %297 = sbr.rel (%p1598_p1) target bundleno = 378 (0x17a), region = 60  ;;  %v301_v3 = vld [vmem:[#allocation6] sm:$0xff] (!%p1598_p1)  ;;  %v1955_v4 = vpack.c.bf16 (!%p1598_p1), %v305_v2, %v302_v1  ;;  %1987 = vmatprep.subr.bf16.mxu1 (!%p1598_p1), %v2620_v5  ;;  %v303_v7 = vld [vmem:[#allocation6 + $0x10] sm:$0xff] (!%p1598_p1)  ;;  %v306_v8 = vld [vmem:[#allocation6 + $0x28] sm:$0xff] (!%p1598_p1)  ;;  %430 = vmatprep.mubr.f32.mxu0 (!%p1598_p1), %v2621_v9  ;;  %s529_s25 = sand.u32 (!%p1598_p1), 1, %s2602_s21 }
  0x79   : > { %v1957_v10 = vpack.c.bf16 (!%p1598_p1), %v304_v6, %v301_v3  ;;  %v1988_v11 = vpack.c.bf16 (!%p1598_p1), %v306_v8, %v303_v7  ;;  %v308_v12 = vld [vmem:[#allocation6 + $0x38] sm:$0xff] (!%p1598_p1)  ;;  %v311_v13 = vld [vmem:[#allocation6 + $0x50] sm:$0xff] (!%p1598_p1)  ;;  %1771 = vmatprep.mubr.msk.f32.mxu1 (!%p1598_p1), %vm2622_vm0, %v2621_v9  ;;  %v310_v16 = vld [vmem:[#allocation6 + $0x48] sm:$0xff] (!%p1598_p1)  ;;  %s1632_s11 = smul.u32 (!%p1598_p1), 72, %s529_s25 }
  0x7a   : > { %v307_v14 = vld [vmem:[#allocation6 + $0x30] sm:$0xff] (!%p1598_p1)  ;;  %1956 = vmatprep.subr.bf16.mxu0 (!%p1598_p1), %v1955_v4  ;;  %v1959_v15 = vpack.c.bf16 (!%p1598_p1), %v311_v13, %v308_v12  ;;  %v309_v17 = vld [vmem:[#allocation6 + $0x40] sm:$0xff] (!%p1598_p1)  ;;  %v312_v18 = vld [vmem:[#allocation6 + $0x58] sm:$0xff] (!%p1598_p1) }
  0x7b   : > { %1958 = vmatpush1.bf16.msra.mxu0 (!%p1598_p1), %v1957_v10  ;;  %1989 = vmatpush3.bf16.msra.mxu1 (!%p1598_p1), %v1988_v11  ;;  %v1961_v19 = vpack.c.bf16 (!%p1598_p1), %v310_v16, %v307_v14  ;;  %v1991_v20 = vpack.c.bf16 (!%p1598_p1), %v312_v18, %v309_v17  ;;  %v314_v21 = vld [vmem:[#allocation6 + $0x68] sm:$0xff] (!%p1598_p1)  ;;  %v317_v22 = vld [vmem:[#allocation6 + $0x80] sm:$0xff] (!%p1598_p1)  ;;  %v316_v25 = vld [vmem:[#allocation6 + $0x78] sm:$0xff] (!%p1598_p1)  ;;  %s532_s13 = scalar_lea.vmem (!%p1598_p1), [#allocation2], %s1632_s11 }
  0x7c   : > { %v313_v23 = vld [vmem:[#allocation6 + $0x60] sm:$0xff] (!%p1598_p1)  ;;  %1960 = vmatprep.subr.bf16.mxu0 (!%p1598_p1), %v1959_v15  ;;  %1990 = vmatprep.subr.bf16.mxu1 (!%p1598_p1), %v2620_v5  ;;  %v1963_v24 = vpack.c.bf16 (!%p1598_p1), %v317_v22, %v314_v21  ;;  %v315_v26 = vld [vmem:[#allocation6 + $0x70] sm:$0xff] (!%p1598_p1)  ;;  %v318_v27 = vld [vmem:[#allocation6 + $0x88] sm:$0xff] (!%p1598_p1)  ;;  %v351_v15 = vlaneseq (!%p1598_p1) }
  0x7d   : > { %v320_v28 = vld [vmem:[#allocation6 + $0x98] sm:$0xff] (!%p1598_p1)  ;;  %v323_v29 = vld [vmem:[#allocation6 + $0xb0] sm:$0xff] (!%p1598_p1)  ;;  %v1965_v30 = vpack.c.bf16 (!%p1598_p1), %v316_v25, %v313_v23  ;;  %v1994_v31 = vpack.c.bf16 (!%p1598_p1), %v318_v27, %v315_v26  ;;  %v322_v34 = vld [vmem:[#allocation6 + $0xa8] sm:$0xff] (!%p1598_p1) }
  0x7e   : > { %v319_v32 = vld [vmem:[#allocation6 + $0x90] sm:$0xff] (!%p1598_p1)  ;;  %v1967_v33 = vpack.c.bf16 (!%p1598_p1), %v323_v29, %v320_v28  ;;  %v321_v35 = vld [vmem:[#allocation6 + $0xa0] sm:$0xff] (!%p1598_p1)  ;;  %v324_v36 = vld [vmem:[#allocation6 + $0xb8] sm:$0xff] (!%p1598_p1)  ;;  %v352_v16 = vshrl.u32 (!%p1598_p1), %v351_v15, 7 }
  0x7f   : > { %1962 = vmatpush1.bf16.msra.mxu0 %v1961_v19  ;;  %1992 = vmatpush3.bf16.msra.mxu1 %v1991_v20  ;;  %v326_v37 = vld [vmem:[#allocation6 + $0xc8] sm:$0xff]  ;;  %v329_v38 = vld [vmem:[#allocation6 + $0xe0] sm:$0xff]  ;;  %v1969_v39 = vpack.c.bf16 %v322_v34, %v319_v32  ;;  %v1997_v40 = vpack.c.bf16 %v324_v36, %v321_v35  ;;  %v328_v43 = vld [vmem:[#allocation6 + $0xd8] sm:$0xff] }
  0x80   : > { %1964 = vmatprep.subr.bf16.mxu0 %v1963_v24  ;;  %1993 = vmatprep.subr.bf16.mxu1 %v2620_v5  ;;  %v325_v41 = vld [vmem:[#allocation6 + $0xc0] sm:$0xff]  ;;  %v1971_v42 = vpack.c.bf16 %v329_v38, %v326_v37  ;;  %v327_v44 = vld [vmem:[#allocation6 + $0xd0] sm:$0xff]  ;;  %v330_v45 = vld [vmem:[#allocation6 + $0xe8] sm:$0xff]  ;;  %v353_v17 = vsub.s32 0, %v352_v16  ;;  %v361_v18 = vsub.s32 2, %v352_v16  ;;  %v357_v20 = vsub.s32 1, %v352_v16 }
  0x81   : > { %v332_v46 = vld [vmem:[#allocation6 + $0xf8] sm:$0xff]  ;;  %v335_v47 = vld [vmem:[#allocation6 + $0x110] sm:$0xff]  ;;  %v1973_v48 = vpack.c.bf16 %v328_v43, %v325_v41  ;;  %v2000_v49 = vpack.c.bf16 %v330_v45, %v327_v44  ;;  %v334_v52 = vld [vmem:[#allocation6 + $0x108] sm:$0xff] }
  0x82   : > { %v331_v50 = vld [vmem:[#allocation6 + $0xf0] sm:$0xff]  ;;  %v1975_v51 = vpack.c.bf16 %v335_v47, %v332_v46  ;;  %v333_v53 = vld [vmem:[#allocation6 + $0x100] sm:$0xff]  ;;  %v336_v54 = vld [vmem:[#allocation6 + $0x118] sm:$0xff] }
  0x83   : > { %1966 = vmatpush1.bf16.msra.mxu0 %v1965_v30  ;;  %1995 = vmatpush3.bf16.msra.mxu1 %v1994_v31  ;;  %v338_v55 = vld [vmem:[#allocation6 + $0x128] sm:$0xff]  ;;  %v341_v56 = vld [vmem:[#allocation6 + $0x140] sm:$0xff]  ;;  %v1977_v57 = vpack.c.bf16 %v334_v52, %v331_v50  ;;  %v2003_v58 = vpack.c.bf16 %v336_v54, %v333_v53  ;;  %v340_v61 = vld [vmem:[#allocation6 + $0x138] sm:$0xff] }
  0x84   : > { %1968 = vmatprep.subr.bf16.mxu0 %v1967_v33  ;;  %1996 = vmatprep.subr.bf16.mxu1 %v2620_v5  ;;  %v337_v59 = vld [vmem:[#allocation6 + $0x120] sm:$0xff]  ;;  %v1979_v60 = vpack.c.bf16 %v341_v56, %v338_v55  ;;  %v339_v62 = vld [vmem:[#allocation6 + $0x130] sm:$0xff]  ;;  %v342_v63 = vld [vmem:[#allocation6 + $0x148] sm:$0xff] }
  0x85   : > { %v344_v0 = vld [vmem:[#allocation6 + $0x158] sm:$0xff]  ;;  %v347_v1 = vld [vmem:[#allocation6 + $0x170] sm:$0xff]  ;;  %v1981_v2 = vpack.c.bf16 %v340_v61, %v337_v59  ;;  %v2006_v3 = vpack.c.bf16 %v342_v63, %v339_v62  ;;  %v346_v7 = vld [vmem:[#allocation6 + $0x168] sm:$0xff] }
  0x86   : > { %v343_v4 = vld [vmem:[#allocation6 + $0x150] sm:$0xff]  ;;  %v1983_v6 = vpack.c.bf16 %v347_v1, %v344_v0  ;;  %v345_v8 = vld [vmem:[#allocation6 + $0x160] sm:$0xff]  ;;  %v348_v10 = vld [vmem:[#allocation6 + $0x178] sm:$0xff] }
  0x87   : > { %1970 = vmatpush1.bf16.msra.mxu0 %v1969_v39  ;;  %1998 = vmatpush3.bf16.msra.mxu1 %v1997_v40  ;;  %v1985_v11 = vpack.c.bf16 %v346_v7, %v343_v4  ;;  %v2009_v12 = vpack.c.bf16 %v348_v10, %v345_v8  ;;  %v298_v13 = vld [vmem:[%s2825_s16] sm:$0xff]  ;;  %v299_v14 = vld [vmem:[%s2825_s16 + $0x8] sm:$0xff]  ;;  %v349_v19 = vld [vmem:[%s3350_s3] sm:$0x7] }
  0x88   : > { %1972 = vmatprep.subr.bf16.mxu0 %v1971_v42  ;;  %1999 = vmatprep.subr.bf16.mxu1 %v2620_v5  ;;  %v354_v21 = vrot.slane %v349_v19, %v353_v17  ;;  %v362_v22 = vrot.slane %v349_v19, %v361_v18  ;;  %v358_v23 = vrot.slane %v349_v19, %v357_v20 }
  0x8b   : > { %1974 = vmatpush1.bf16.msra.mxu0 %v1973_v48  ;;  %2001 = vmatpush3.bf16.msra.mxu1 %v2000_v49 }
  0x8c   : > { %1976 = vmatprep.subr.bf16.mxu0 %v1975_v51  ;;  %2002 = vmatprep.subr.bf16.mxu1 %v2620_v5 }
  0x8f   : > { %1978 = vmatpush1.bf16.msra.mxu0 %v1977_v57  ;;  %2004 = vmatpush3.bf16.msra.mxu1 %v2003_v58 }
  0x90   : > { %1980 = vmatprep.subr.bf16.mxu0 %v1979_v60  ;;  %2005 = vmatprep.subr.bf16.mxu1 %v2620_v5 }
  0x93   : > { %1982 = vmatpush1.bf16.msra.mxu0 %v1981_v2  ;;  %2007 = vmatpush3.bf16.msra.mxu1 %v2006_v3 }
  0x94   : > { %1984 = vmatprep.subr.bf16.mxu0 %v1983_v6  ;;  %2008 = vmatprep.subr.bf16.mxu1 %v2620_v5  ;;  %v300_v5 = vld [vmem:[%s2825_s16 + $0x10] sm:$0xff] }
  0x97   : > { %1986 = vmatpush1.bf16.msra.mxu0 %v1985_v11  ;;  %2010 = vmatpush3.bf16.msra.mxu1 %v2009_v12 }
  0x9a   : > { %431 = vmatmul.mubr.f32.vlgmr.msra.gmra.mrb[0].mxu0 %v298_v13  ;;  %1772 = vmatmul.mubr.f32.vlgmr.msra.gmra.mrb[0].mxu1 %v298_v13 }
  0x9b   : > { %436 = vmatprep.mubr.f32.mxu0 %v2621_v9  ;;  %1774 = vmatprep.mubr.msk.f32.mxu1 %vm2622_vm0, %v2621_v9 }
  0x9e   : > { %437 = vmatmul.mubr.f32.gmra.mrb[2].mxu0 %v299_v14  ;;  %1775 = vmatmul.mubr.f32.gmra.mrb[2].mxu1 %v299_v14 }
  0x9f   : > { %442 = vmatprep.mubr.f32.mxu0 %v2621_v9  ;;  %1777 = vmatprep.mubr.msk.f32.mxu1 %vm2622_vm0, %v2621_v9 }
  0xa2   : > { %443 = vmatmul.mubr.f32.gmra.mrb[4].mxu0 %v300_v5  ;;  %1778 = vmatmul.mubr.f32.gmra.mrb[4].mxu1 %v300_v5 }
 0x16d   : > { %v432_v24 = vpop.f32.mrb[0].mxu0  ;;  %v515_v25 = vpop.f32.mrb[0].mxu1 }
 0x16e   : > { %v433_v9 = vadd.f32 %v432_v24, %v354_v21  ;;  %v516_v26 = vadd.f32 %v515_v25, %v362_v22  ;;  %v434_v27 = vpop.f32.mrb[1].mxu0  ;;  %v1773_v28 = vpop.f32.mrb[1].mxu1 }
 0x16f   : > { %v435_v29 = vadd.f32 %v434_v27, %v358_v23 }
 0x170   : > { %533 = vst [vmem:[%s532_s13] sm:$0xff] %v433_v9  ;;  %535 = vst [vmem:[%s532_s13 + $0x10] sm:$0xff] %v516_v26 }
 0x171   : > { %534 = vst [vmem:[%s532_s13 + $0x8] sm:$0xff] %v435_v29  ;;  %v438_v30 = vpop.f32.mrb[2].mxu0  ;;  %v520_v31 = vpop.f32.mrb[2].mxu1 }
 0x172   : > { %v439_v32 = vadd.f32 %v438_v30, %v354_v21  ;;  %v521_v33 = vadd.f32 %v520_v31, %v362_v22  ;;  %v440_v34 = vpop.f32.mrb[3].mxu0  ;;  %v1776_v35 = vpop.f32.mrb[3].mxu1 }
 0x173   : > { %v441_v36 = vadd.f32 %v440_v34, %v358_v23 }
 0x174   : > { %536 = vst [vmem:[%s532_s13 + $0x18] sm:$0xff] %v439_v32  ;;  %538 = vst [vmem:[%s532_s13 + $0x28] sm:$0xff] %v521_v33 }
 0x175   : > { %537 = vst [vmem:[%s532_s13 + $0x20] sm:$0xff] %v441_v36  ;;  %v444_v37 = vpop.f32.mrb[4].mxu0  ;;  %v525_v38 = vpop.f32.mrb[4].mxu1 }
 0x176   : > { %v445_v39 = vadd.f32 %v444_v37, %v354_v21  ;;  %v526_v40 = vadd.f32 %v525_v38, %v362_v22  ;;  %v446_v41 = vpop.f32.mrb[5].mxu0  ;;  %v1779_v42 = vpop.f32.mrb[5].mxu1 }
 0x177   : > { %v447_v43 = vadd.f32 %v446_v41, %v358_v23 }
 0x178   : > { %539 = vst [vmem:[%s532_s13 + $0x30] sm:$0xff] %v445_v39  ;;  %541 = vst [vmem:[%s532_s13 + $0x40] sm:$0xff] %v526_v40 }
 0x179   : > { %540 = vst [vmem:[%s532_s13 + $0x38] sm:$0xff] %v447_v43 }
 0x17a PF: > { %p1600_p4 = scmp.le.s32.totalorder %s2602_s21, 0 }
 0x17c   : > { %545 = sbr.rel (%p1600_p4) target bundleno = 1765 (0x6e5), region = 64 }
 0x183   : > { %s546_s14 = sadd.s32 1, %s2602_s21  ;;  %v2865_v44 = vld [vmem:[#allocation8] sm:$0xff]  ;;  %v2867_v45 = vld [vmem:[#allocation8 + $0x8] sm:$0xff]  ;;  %v2869_v46 = vld [vmem:[#allocation8 + $0x10] sm:$0xff]  ;;  %v3379_v35 = vmov (!%p1598_p1), 0.0|0.0   ;;  %v3357_v37 = vmov (!%p1598_p1), 0.0  }
 0x184   : > { %s2871_s15 = sand.u32 1, %s546_s14  ;;  %v2873_v47 = vld [vmem:[#allocation8 + $0x18] sm:$0xff]  ;;  %v2875_v48 = vld [vmem:[#allocation8 + $0x20] sm:$0xff]  ;;  %v2877_v49 = vld [vmem:[#allocation8 + $0x28] sm:$0xff]  ;;  %2043 = vmatprep.subr.bf16.mxu1 (!%p1598_p1), %v3379_v35  ;;  %687 = vmatprep.mubr.f32.mxu0 (!%p1598_p1), %v3357_v37  ;;  %vm2625_vm1 = vmmov (!%p1598_p1), 0  }
 0x185   : > { %v2879_v50 = vld [vmem:[#allocation8 + $0x30] sm:$0xff]  ;;  %v2881_v51 = vld [vmem:[#allocation8 + $0x38] sm:$0xff]  ;;  %v2883_v52 = vld [vmem:[#allocation8 + $0x40] sm:$0xff]  ;;  %v2974_v30 = vpack.c.bf16 (!%p1598_p1), %v2875_v48, %v2867_v45  ;;  %v2978_v31 = vpack.c.bf16 (!%p1598_p1), %v2873_v47, %v2865_v44  ;;  %v2998_v36 = vpack.c.bf16 (!%p1598_p1), %v2877_v49, %v2869_v46  ;;  %1812 = vmatprep.mubr.msk.f32.mxu1 (!%p1598_p1), %vm2625_vm1, %v3357_v37  ;;  %s1633_s10 = smul.u32 (!%p1598_p1), 72, %s2871_s15 }
 0x186   : > { %v2885_v53 = vld [vmem:[#allocation8 + $0x48] sm:$0xff]  ;;  %v2887_v54 = vld [vmem:[#allocation8 + $0x50] sm:$0xff]  ;;  %v2889_v55 = vld [vmem:[#allocation8 + $0x58] sm:$0xff] }
 0x187   : > { %v2891_v56 = vld [vmem:[#allocation8 + $0x60] sm:$0xff]  ;;  %v2893_v57 = vld [vmem:[#allocation8 + $0x68] sm:$0xff]  ;;  %v2895_v58 = vld [vmem:[#allocation8 + $0x70] sm:$0xff]  ;;  %v2982_v32 = vpack.c.bf16 (!%p1598_p1), %v2887_v54, %v2881_v51  ;;  %2012 = vmatprep.subr.bf16.mxu0 (!%p1598_p1), %v2974_v30  ;;  %v2988_v33 = vpack.c.bf16 (!%p1598_p1), %v2885_v53, %v2879_v50  ;;  %2045 = vmatpush3.bf16.msra.mxu1 (!%p1598_p1), %v2998_v36  ;;  %v3004_v38 = vpack.c.bf16 (!%p1598_p1), %v2889_v55, %v2883_v52  ;;  %s3149_s12 = scalar_lea.vmem (!%p1598_p1), [#allocation2], %s1633_s10 }
 0x188   : > { %3399 = vst [vmem:[#allocation13_spill] sm:$0xff] %v2895_v58  ;;  %v2897_v59 = vld [vmem:[#allocation8 + $0x78] sm:$0xff]  ;;  %v2899_v60 = vld [vmem:[#allocation8 + $0x80] sm:$0xff]  ;;  %v2901_v61 = vld [vmem:[#allocation8 + $0x88] sm:$0xff]  ;;  %2014 = vmatpush1.bf16.msra.mxu0 (!%p1598_p1), %v2978_v31  ;;  %2046 = vmatprep.subr.bf16.mxu1 (!%p1598_p1), %v3379_v35 }
 0x189   : > { %3400 = vst [vmem:[#allocation14_spill] sm:$0xff] %v2901_v61  ;;  %v2903_v62 = vld [vmem:[#allocation8 + $0x90] sm:$0xff]  ;;  %v2905_v63 = vld [vmem:[#allocation8 + $0x98] sm:$0xff]  ;;  %v2907_v0 = vld [vmem:[#allocation8 + $0xa0] sm:$0xff]  ;;  %2016 = vmatprep.subr.bf16.mxu0 (!%p1598_p1), %v2982_v32  ;;  %v2993_v34 = vpack.c.bf16 (!%p1598_p1), %v2899_v60, %v2893_v57  ;;  %v3009_v39 = vpack.c.bf16 (!%p1598_p1), %v2897_v59, %v2891_v56  ;;  %v3022_v41 = vpack.c.bf16 (!%p1598_p1), %v2901_v61, %v2895_v58 }
 0x18a   : > { %3401 = vst [vmem:[#allocation15_spill] sm:$0xff] %v2903_v62  ;;  %3402 = vst [vmem:[#allocation16_spill] sm:$0xff] %v2907_v0  ;;  %v2909_v1 = vld [vmem:[#allocation8 + $0xa8] sm:$0xff]  ;;  %v2911_v2 = vld [vmem:[#allocation8 + $0xb0] sm:$0xff] }
 0x18b   : > { %3403 = vst [vmem:[#allocation17_spill] sm:$0xff] %v2909_v1  ;;  %v2913_v3 = vld [vmem:[#allocation8 + $0xb8] sm:$0xff]  ;;  %v2915_v4 = vld [vmem:[#allocation8 + $0xc0] sm:$0xff]  ;;  %v2917_v6 = vld [vmem:[#allocation8 + $0xc8] sm:$0xff]  ;;  %v3015_v40 = vpack.c.bf16 (!%p1598_p1), %v2911_v2, %v2905_v63  ;;  %2048 = vmatpush3.bf16.msra.mxu1 (!%p1598_p1), %v3004_v38  ;;  %v3027_v42 = vpack.c.bf16 (!%p1598_p1), %v2909_v1, %v2903_v62 }
 0x18c   : > { %3404 = vst [vmem:[#allocation18_spill] sm:$0xff] %v2913_v3  ;;  %3405 = vst [vmem:[#allocation19_spill] sm:$0xff] %v2915_v4  ;;  %v2919_v7 = vld [vmem:[#allocation8 + $0xd0] sm:$0xff]  ;;  %v2921_v8 = vld [vmem:[#allocation8 + $0xd8] sm:$0xff]  ;;  %2018 = vmatpush1.bf16.msra.mxu0 (!%p1598_p1), %v2988_v33  ;;  %2049 = vmatprep.subr.bf16.mxu1 (!%p1598_p1), %v3379_v35  ;;  %v3038_v37 = vpack.c.bf16 (!%p1598_p1), %v2913_v3, %v2907_v0 }
 0x18d   : > { %3406 = vst [vmem:[#allocation20_spill] sm:$0xff] %v2917_v6  ;;  %3407 = vst [vmem:[#allocation21_spill] sm:$0xff] %v2919_v7  ;;  %v2923_v10 = vld [vmem:[#allocation8 + $0xe0] sm:$0xff]  ;;  %v2925_v11 = vld [vmem:[#allocation8 + $0xe8] sm:$0xff]  ;;  %2020 = vmatprep.subr.bf16.mxu0 (!%p1598_p1), %v2993_v34  ;;  %v3043_v1 = vpack.c.bf16 (!%p1598_p1), %v2921_v8, %v2915_v4 }
 0x18e   : > { %3408 = vst [vmem:[#allocation22_spill] sm:$0xff] %v2921_v8  ;;  %3409 = vst [vmem:[#allocation23_spill] sm:$0xff] %v2923_v10  ;;  %v2927_v12 = vld [vmem:[#allocation8 + $0xf0] sm:$0xff]  ;;  %v2929_v13 = vld [vmem:[#allocation8 + $0xf8] sm:$0xff]  ;;  %v3033_v43 = vpack.c.bf16 (!%p1598_p1), %v2923_v10, %v2917_v6  ;;  %v3054_v3 = vpack.c.bf16 (!%p1598_p1), %v2925_v11, %v2919_v7 }
 0x18f   : > { %3410 = vst [vmem:[#allocation24_spill] sm:$0xff] %v2925_v11  ;;  %3411 = vst [vmem:[#allocation25_spill] sm:$0xff] %v2927_v12  ;;  %v2931_v14 = vld [vmem:[#allocation8 + $0x100] sm:$0xff]  ;;  %v2933_v5 = vld [vmem:[#allocation8 + $0x108] sm:$0xff]  ;;  %2051 = vmatpush3.bf16.msra.mxu1 (!%p1598_p1), %v3022_v41 }
 0x190   : > { %3412 = vst [vmem:[#allocation26_spill] sm:$0xff] %v2929_v13  ;;  %3413 = vst [vmem:[#allocation27_spill] sm:$0xff] %v2931_v14  ;;  %v2935_v15 = vld [vmem:[#allocation8 + $0x110] sm:$0xff]  ;;  %v2937_v16 = vld [vmem:[#allocation8 + $0x118] sm:$0xff]  ;;  %2022 = vmatpush1.bf16.msra.mxu0 (!%p1598_p1), %v3009_v39  ;;  %2052 = vmatprep.subr.bf16.mxu1 (!%p1598_p1), %v3379_v35  ;;  %v3059_v8 = vpack.c.bf16 (!%p1598_p1), %v2933_v5, %v2927_v12 }
 0x191   : > { %3414 = vst [vmem:[#allocation28_spill] sm:$0xff] %v2933_v5  ;;  %3415 = vst [vmem:[#allocation29_spill] sm:$0xff] %v2935_v15  ;;  %v2939_v17 = vld [vmem:[#allocation8 + $0x120] sm:$0xff]  ;;  %v2941_v18 = vld [vmem:[#allocation8 + $0x128] sm:$0xff]  ;;  %2024 = vmatprep.subr.bf16.mxu0 (!%p1598_p1), %v3015_v40  ;;  %v3049_v10 = vpack.c.bf16 (!%p1598_p1), %v2935_v15, %v2929_v13  ;;  %v3070_v11 = vpack.c.bf16 (!%p1598_p1), %v2937_v16, %v2931_v14 }
 0x192   : > { %3416 = vst [vmem:[#allocation30_spill] sm:$0xff] %v2937_v16  ;;  %3417 = vst [vmem:[#allocation31_spill] sm:$0xff] %v2939_v17  ;;  %v2943_v19 = vld [vmem:[#allocation8 + $0x130] sm:$0xff]  ;;  %v2945_v20 = vld [vmem:[#allocation8 + $0x138] sm:$0xff]  ;;  %600 = sbr.rel (%p1598_p1) target bundleno = 1207 (0x4b7), region = 68 }
 0x193   : > { %3418 = vst [vmem:[#allocation32_spill] sm:$0xff] %v2941_v18  ;;  %3419 = vst [vmem:[#allocation33_spill] sm:$0xff] %v2943_v19  ;;  %v2947_v21 = vld [vmem:[#allocation8 + $0x140] sm:$0xff]  ;;  %v2949_v22 = vld [vmem:[#allocation8 + $0x148] sm:$0xff]  ;;  %2054 = vmatpush3.bf16.msra.mxu1 (!%p1598_p1), %v3038_v37  ;;  %v3075_v5 = vpack.c.bf16 (!%p1598_p1), %v2945_v20, %v2939_v17 }
 0x194   : > { %3420 = vst [vmem:[#allocation34_spill] sm:$0xff] %v2945_v20  ;;  %3421 = vst [vmem:[#allocation35_spill] sm:$0xff] %v2947_v21  ;;  %v2951_v23 = vld [vmem:[#allocation8 + $0x150] sm:$0xff]  ;;  %v2953_v24 = vld [vmem:[#allocation8 + $0x158] sm:$0xff]  ;;  %2026 = vmatpush1.bf16.msra.mxu0 (!%p1598_p1), %v3027_v42  ;;  %2055 = vmatprep.subr.bf16.mxu1 (!%p1598_p1), %v3379_v35  ;;  %v3065_v15 = vpack.c.bf16 (!%p1598_p1), %v2947_v21, %v2941_v18  ;;  %v3086_v16 = vpack.c.bf16 (!%p1598_p1), %v2949_v22, %v2943_v19 }
 0x195   : > { %3422 = vst [vmem:[#allocation36_spill] sm:$0xff] %v2949_v22  ;;  %3423 = vst [vmem:[#allocation37_spill] sm:$0xff] %v2951_v23  ;;  %v2955_v25 = vld [vmem:[#allocation8 + $0x160] sm:$0xff]  ;;  %v2957_v9 = vld [vmem:[#allocation8 + $0x168] sm:$0xff]  ;;  %2028 = vmatprep.subr.bf16.mxu0 (!%p1598_p1), %v3033_v43 }
 0x196   : > { %3424 = vst [vmem:[#allocation38_spill] sm:$0xff] %v2953_v24  ;;  %3425 = vst [vmem:[#allocation39_spill] sm:$0xff] %v2955_v25  ;;  %v2959_v26 = vld [vmem:[#allocation8 + $0x170] sm:$0xff]  ;;  %v2961_v27 = vld [vmem:[#allocation8 + $0x178] sm:$0xff]  ;;  %v3091_v20 = vpack.c.bf16 (!%p1598_p1), %v2957_v9, %v2951_v23 }
 0x197   : > { %3426 = vst [vmem:[#allocation40_spill] sm:$0xff] %v2957_v9  ;;  %3427 = vst [vmem:[#allocation41_spill] sm:$0xff] %v2959_v26  ;;  %v2966_v28 = vld [vmem:[%s3351_s4] sm:$0x7]  ;;  %2057 = vmatpush3.bf16.msra.mxu1 (!%p1598_p1), %v3054_v3  ;;  %v3081_v21 = vpack.c.bf16 (!%p1598_p1), %v2959_v26, %v2953_v24  ;;  %v3098_v26 = vpack.c.bf16 (!%p1598_p1), %v2961_v27, %v2955_v25  ;;  %v3429_v9 = vmov (!%p1598_p1), 0.0   ;;  %v605_v12 = vld [vmem:[%s3149_s12 + $0x8] sm:$0xff] (!%p1598_p1) }
 0x198   : > { %3428 = vst [vmem:[#allocation42_spill] sm:$0xff] %v2961_v27  ;;  %v2968_v29 = vld [vmem:[#allocation9] sm:$0xff]  ;;  %2030 = vmatpush1.bf16.msra.mxu0 (!%p1598_p1), %v3043_v1  ;;  %2058 = vmatprep.subr.bf16.mxu1 (!%p1598_p1), %v3379_v35  ;;  %v608_v27 = vlaneseq (!%p1598_p1) }
 0x199   : > { %2032 = vmatprep.subr.bf16.mxu0 %v3049_v10 }
 0x19a   : > { %v609_v25 = vshrl.u32 %v608_v27, 7 }
 0x19b   : > { %2060 = vmatpush3.bf16.msra.mxu1 %v3070_v11 }
 0x19c   : > { %2034 = vmatpush1.bf16.msra.mxu0 %v3059_v8  ;;  %2061 = vmatprep.subr.bf16.mxu1 %v3379_v35  ;;  %v610_v23 = vsub.s32 0, %v609_v25  ;;  %v614_v22 = vsub.s32 1, %v609_v25  ;;  %v618_v62 = vsub.s32 2, %v609_v25 }
 0x19d   : > { %2036 = vmatprep.subr.bf16.mxu0 %v3065_v15 }
 0x19e   : > { %v3144_v19 = vrot.slane %v2966_v28, %v610_v23  ;;  %v3147_v24 = vrot.slane %v2966_v28, %v614_v22  ;;  %v3156_v61 = vrot.slane %v2966_v28, %v618_v62  ;;  %v1606_v62 = vld [vmem:[%s3149_s12 + $0x18] sm:$0xff] }
 0x19f   : > { %2063 = vmatpush3.bf16.msra.mxu1 %v3086_v16 }
 0x1a0   : > { %2038 = vmatpush1.bf16.msra.mxu0 %v3075_v5  ;;  %2064 = vmatprep.subr.bf16.mxu1 %v3379_v35 }
 0x1a1   : > { %2040 = vmatprep.subr.bf16.mxu0 %v3081_v21 }
 0x1a3   : > { %2066 = vmatpush3.bf16.msra.mxu1 %v3098_v26 }
 0x1a4   : > { %2042 = vmatpush1.bf16.msra.mxu0 %v3091_v20  ;;  %2099 = vmatprep.subr.bf16.mxu1 %v3379_v35 }
 0x1a5   : > { %2068 = vmatprep.subr.bf16.mxu0 %v2974_v30 }
 0x1a6   : > { %1813 = vmatmul.mubr.f32.vlgmr.msra.gmra.mrb[0].mxu1 %v2968_v29 }
 0x1a7   : > { %688 = vmatmul.mubr.f32.vlgmr.msra.gmra.mrb[0].mxu0 %v2968_v29  ;;  %2101 = vmatpush3.bf16.msra.mxu1 %v2998_v36 }
 0x1a8   : > { %2070 = vmatpush1.bf16.msra.mxu0 %v2978_v31  ;;  %855 = vmatprep.mubr.f32.mxu0 %v3429_v9 }
 0x1a9   : > { %2072 = vmatprep.subr.bf16.mxu0 %v2982_v32  ;;  %1847 = vmatprep.mubr.msk.f32.mxu1 %vm2625_vm1, %v3429_v9 }
 0x1aa   : > { %2102 = vmatprep.subr.bf16.mxu1 %v3379_v35 }
 0x1ab   : > { %2104 = vmatpush3.bf16.msra.mxu1 %v3004_v38 }
 0x1ac   : > { %2074 = vmatpush1.bf16.msra.mxu0 %v2988_v33  ;;  %2105 = vmatprep.subr.bf16.mxu1 %v3379_v35 }
 0x1ad   : > { %2076 = vmatprep.subr.bf16.mxu0 %v2993_v34 }
 0x1af   : > { %2107 = vmatpush3.bf16.msra.mxu1 %v3022_v41 }
 0x1b0   : > { %2078 = vmatpush1.bf16.msra.mxu0 %v3009_v39  ;;  %2108 = vmatprep.subr.bf16.mxu1 %v3379_v35 }
 0x1b1   : > { %2080 = vmatprep.subr.bf16.mxu0 %v3015_v40 }
 0x1b3   : > { %2110 = vmatpush3.bf16.msra.mxu1 %v3038_v37 }
 0x1b4   : > { %2082 = vmatpush1.bf16.msra.mxu0 %v3027_v42  ;;  %2111 = vmatprep.subr.bf16.mxu1 %v3379_v35 }
 0x1b5   : > { %2084 = vmatprep.subr.bf16.mxu0 %v3033_v43 }
 0x1b7   : > { %2113 = vmatpush3.bf16.msra.mxu1 %v3054_v3 }
 0x1b8   : > { %2086 = vmatpush1.bf16.msra.mxu0 %v3043_v1  ;;  %2114 = vmatprep.subr.bf16.mxu1 %v3379_v35 }
 0x1b9   : > { %2088 = vmatprep.subr.bf16.mxu0 %v3049_v10 }
 0x1bb   : > { %2116 = vmatpush3.bf16.msra.mxu1 %v3070_v11 }
 0x1bc   : > { %2090 = vmatpush1.bf16.msra.mxu0 %v3059_v8  ;;  %2117 = vmatprep.subr.bf16.mxu1 %v3379_v35 }
 0x1bd   : > { %2092 = vmatprep.subr.bf16.mxu0 %v3065_v15 }
 0x1bf   : > { %2119 = vmatpush3.bf16.msra.mxu1 %v3086_v16 }
 0x1c0   : > { %2094 = vmatpush1.bf16.msra.mxu0 %v3075_v5  ;;  %2120 = vmatprep.subr.bf16.mxu1 %v3379_v35 }
 0x1c1   : > { %2096 = vmatprep.subr.bf16.mxu0 %v3081_v21 }
 0x1c3   : > { %2122 = vmatpush3.bf16.msra.mxu1 %v3098_v26 }
 0x1c4   : > { %2098 = vmatpush1.bf16.msra.mxu0 %v3091_v20  ;;  %2155 = vmatprep.subr.bf16.mxu1 %v3379_v35 }
 0x1c5   : > { %2124 = vmatprep.subr.bf16.mxu0 %v2974_v30  ;;  %v604_v30 = vld [vmem:[%s3149_s12] sm:$0xff] }
 0x279   : > { %v760_v7 = vpop.f32.mrb[0].mxu1 }
 0x27a   : > { %v689_v17 = vpop.f32.mrb[0].mxu0  ;;  %v1814_v23 = vpop.f32.mrb[1].mxu1 }
 0x27b   : > { %v690_v14 = vadd.f32 %v689_v17, %v3144_v19  ;;  %v691_v35 = vpop.f32.mrb[1].mxu0 }
 0x27c   : > { %v692_v27 = vadd.f32 %v691_v35, %v3147_v24 }
 0x27d   : > { %v764_v18 = vadd.f32 %v690_v14, %v604_v30  ;;  %v761_v14 = vadd.f32 %v760_v7, %v3156_v61  ;;  %v606_v30 = vld [vmem:[%s3149_s12 + $0x10] sm:$0xff] }
 0x27e   : > { %v771_v4 = vadd.f32 %v692_v27, %v605_v12 }
 0x27f   : > { %v1603_v13 = vmul.f32 -1.442695, %v764_v18 }
 0x280   : > { %v1604_v22 = vmul.f32 -1.442695, %v771_v4 }
 0x281   : > { %2390 = vpow2.f32 %v1603_v13 }
 0x282   : > { %2392 = vpow2.f32 %v1604_v22  ;;  %v1612_v22 = vld [vmem:[%s3149_s12 + $0x30] sm:$0xff] }
 0x28b   : > { %v2391_v0 = vpop.eup %2390 }
 0x28c   : > { %v768_v6 = vadd.f32 1.0, %v2391_v0  ;;  %v2393_v17 = vpop.eup %2392 }
 0x28d   : > { %v775_v58 = vadd.f32 1.0, %v2393_v17 }
 0x28e   : > { %2394 = vrcp.f32 %v768_v6 }
 0x28f   : > { %2396 = vrcp.f32 %v775_v58  ;;  %v3430_v58 = vmov 0.0|0.0  }
 0x298   : > { %v2395_v35 = vpop.eup %2394 }
 0x299   : > { %v778_v23 = vmul.f32 %v2395_v35, %v761_v14  ;;  %v2397_v12 = vpop.eup %2396 }
 0x29a   : > { %v781_v4 = vsub.f32 1.0, %v2397_v12  ;;  %v783_v0 = vmul.f32 %v2397_v12, %v2968_v29 }
 0x29b   : > { %v779_v18 = vadd.f32 %v778_v23, %v606_v30 }
 0x29d   : > { %2398 = vtanh.f32 %v779_v18 }
 0x2a7   : > { %v2399_v13 = vpop.eup %2398 }
 0x2a8   : > { %v782_v27 = vmul.f32 %v2399_v13, %v781_v4  ;;  %v1613_v4 = vld [vmem:[%s3149_s12 + $0x38] sm:$0xff] }
 0x2aa   : > { %v3161_v6 = vadd.f32 %v783_v0, %v782_v27 }
 0x2ac   : > { %856 = vmatmul.mubr.f32.vlgmr.msra.gmra.mrb[2].mxu0 %v3161_v6  ;;  %1848 = vmatmul.mubr.f32.vlgmr.msra.gmra.mrb[2].mxu1 %v3161_v6 }
 0x2ad   : > { %2126 = vmatpush1.bf16.msra.mxu0 %v2978_v31  ;;  %2157 = vmatpush3.bf16.msra.mxu1 %v2998_v36 }
 0x2ae   : > { %2128 = vmatprep.subr.bf16.mxu0 %v2982_v32  ;;  %2158 = vmatprep.subr.bf16.mxu1 %v3430_v58 }
 0x2af   : > { %1023 = vmatprep.mubr.f32.mxu0 %v3429_v9  ;;  %1882 = vmatprep.mubr.msk.f32.mxu1 %vm2625_vm1, %v3429_v9 }
 0x2b1   : > { %2130 = vmatpush1.bf16.msra.mxu0 %v2988_v33  ;;  %2160 = vmatpush3.bf16.msra.mxu1 %v3004_v38 }
 0x2b2   : > { %2132 = vmatprep.subr.bf16.mxu0 %v2993_v34  ;;  %2161 = vmatprep.subr.bf16.mxu1 %v3430_v58  ;;  %v1608_v34 = vld [vmem:[%s3149_s12 + $0x28] sm:$0xff] }
 0x2b5   : > { %2134 = vmatpush1.bf16.msra.mxu0 %v3009_v39  ;;  %2163 = vmatpush3.bf16.msra.mxu1 %v3022_v41 }
 0x2b6   : > { %2136 = vmatprep.subr.bf16.mxu0 %v3015_v40  ;;  %2164 = vmatprep.subr.bf16.mxu1 %v3430_v58 }
 0x2b9   : > { %2138 = vmatpush1.bf16.msra.mxu0 %v3027_v42  ;;  %2166 = vmatpush3.bf16.msra.mxu1 %v3038_v37 }
 0x2ba   : > { %2140 = vmatprep.subr.bf16.mxu0 %v3033_v43  ;;  %2167 = vmatprep.subr.bf16.mxu1 %v3430_v58 }
 0x2bd   : > { %2142 = vmatpush1.bf16.msra.mxu0 %v3043_v1  ;;  %2169 = vmatpush3.bf16.msra.mxu1 %v3054_v3 }
 0x2be   : > { %2144 = vmatprep.subr.bf16.mxu0 %v3049_v10  ;;  %2170 = vmatprep.subr.bf16.mxu1 %v3430_v58 }
 0x2c1   : > { %2146 = vmatpush1.bf16.msra.mxu0 %v3059_v8  ;;  %2172 = vmatpush3.bf16.msra.mxu1 %v3070_v11 }
 0x2c2   : > { %2148 = vmatprep.subr.bf16.mxu0 %v3065_v15  ;;  %2173 = vmatprep.subr.bf16.mxu1 %v3430_v58  ;;  %v1607_v15 = vld [vmem:[%s3149_s12 + $0x20] sm:$0xff] }
 0x2c5   : > { %2150 = vmatpush1.bf16.msra.mxu0 %v3075_v5  ;;  %2175 = vmatpush3.bf16.msra.mxu1 %v3086_v16 }
 0x2c6   : > { %2152 = vmatprep.subr.bf16.mxu0 %v3081_v21  ;;  %2176 = vmatprep.subr.bf16.mxu1 %v3430_v58 }
 0x2c9   : > { %2154 = vmatpush1.bf16.msra.mxu0 %v3091_v20  ;;  %2178 = vmatpush3.bf16.msra.mxu1 %v3098_v26 }
 0x37f   : > { %v857_v1 = vpop.f32.mrb[2].mxu0  ;;  %v928_v3 = vpop.f32.mrb[2].mxu1 }
 0x380   : > { %v858_v7 = vadd.f32 %v857_v1, %v3144_v19  ;;  %v859_v8 = vpop.f32.mrb[3].mxu0  ;;  %v1849_v10 = vpop.f32.mrb[3].mxu1  ;;  %v929_v32 = vadd.f32 %v928_v3, %v3156_v61 }
 0x381   : > { %v860_v11 = vadd.f32 %v859_v8, %v3147_v24 }
 0x382   : > { %v932_v5 = vadd.f32 %v1606_v62, %v858_v7  ;;  %v1614_v7 = vld [vmem:[%s3149_s12 + $0x40] sm:$0xff] }
 0x383   : > { %v939_v21 = vadd.f32 %v1607_v15, %v860_v11 }
 0x384   : > { %v1609_v16 = vmul.f32 -1.442695, %v932_v5 }
 0x385   : > { %v1610_v25 = vmul.f32 -1.442695, %v939_v21 }
 0x386   : > { %2400 = vpow2.f32 %v1609_v16 }
 0x387   : > { %2402 = vpow2.f32 %v1610_v25 }
 0x390   : > { %v2401_v20 = vpop.eup %2400 }
 0x391   : > { %v936_v9 = vadd.f32 1.0, %v2401_v20  ;;  %v2403_v26 = vpop.eup %2402 }
 0x392   : > { %v943_v31 = vadd.f32 1.0, %v2403_v26 }
 0x393   : > { %2404 = vrcp.f32 %v936_v9 }
 0x394   : > { %2406 = vrcp.f32 %v943_v31 }
 0x39d   : > { %v2405_v33 = vpop.eup %2404 }
 0x39e   : > { %v946_v36 = vmul.f32 %v2405_v33, %v929_v32  ;;  %v2407_v38 = vpop.eup %2406 }
 0x39f   : > { %v949_v39 = vsub.f32 1.0, %v2407_v38  ;;  %v951_v42 = vmul.f32 %v2407_v38, %v3161_v6 }
 0x3a0   : > { %v947_v37 = vadd.f32 %v1608_v34, %v946_v36 }
 0x3a2   : > { %2408 = vtanh.f32 %v947_v37 }
 0x3ac   : > { %v2409_v40 = vpop.eup %2408 }
 0x3ad   : > { %v950_v41 = vmul.f32 %v2409_v40, %v949_v39 }
 0x3af   : > { %v952_v43 = vadd.f32 %v951_v42, %v950_v41 }
 0x3b1   : > { %1024 = vmatmul.mubr.f32.vlgmr.msra.gmra.mrb[4].mxu0 %v952_v43  ;;  %1883 = vmatmul.mubr.f32.vlgmr.msra.gmra.mrb[4].mxu1 %v952_v43 }
 0x484   : > { %v1025_v17 = vpop.f32.mrb[4].mxu0  ;;  %v1096_v14 = vpop.f32.mrb[4].mxu1 }
 0x485   : > { %v1026_v35 = vadd.f32 %v1025_v17, %v3144_v19  ;;  %v1027_v30 = vpop.f32.mrb[5].mxu0  ;;  %v1884_v23 = vpop.f32.mrb[5].mxu1  ;;  %v1097_v3 = vadd.f32 %v1096_v14, %v3156_v61 }
 0x486   : > { %v1028_v18 = vadd.f32 %v1027_v30, %v3147_v24 }
 0x487   : > { %v1100_v12 = vadd.f32 %v1612_v22, %v1026_v35 }
 0x488   : > { %v1107_v27 = vadd.f32 %v1613_v4, %v1028_v18 }
 0x489   : > { %v1615_v13 = vmul.f32 -1.442695, %v1100_v12 }
 0x48a   : > { %v1616_v0 = vmul.f32 -1.442695, %v1107_v27 }
 0x48b   : > { %2410 = vpow2.f32 %v1615_v13 }
 0x48c   : > { %2412 = vpow2.f32 %v1616_v0 }
 0x495   : > { %v2411_v6 = vpop.eup %2410 }
 0x496   : > { %v1104_v58 = vadd.f32 1.0, %v2411_v6  ;;  %v2413_v62 = vpop.eup %2412 }
 0x497   : > { %v1111_v1 = vadd.f32 1.0, %v2413_v62 }
 0x498   : > { %2414 = vrcp.f32 %v1104_v58 }
 0x499   : > { %2416 = vrcp.f32 %v1111_v1 }
 0x4a2   : > { %v2415_v19 = vpop.eup %2414 }
 0x4a3   : > { %v1114_v8 = vmul.f32 %v2415_v19, %v1097_v3  ;;  %v2417_v24 = vpop.eup %2416 }
 0x4a4   : > { %v1117_v11 = vsub.f32 1.0, %v2417_v24  ;;  %v1119_v16 = vmul.f32 %v2417_v24, %v952_v43 }
 0x4a5   : > { %v1115_v10 = vadd.f32 %v1614_v7, %v1114_v8 }
 0x4a7   : > { %2418 = vtanh.f32 %v1115_v10 }
 0x4b1   : > { %v2419_v5 = vpop.eup %2418 }
 0x4b2   : > { %v1118_v15 = vmul.f32 %v2419_v5, %v1117_v11 }
 0x4b4   : > { %v1120_v21 = vadd.f32 %v1119_v16, %v1118_v15 }
 0x4b6   : > { %1121 = vst [vmem:[#allocation9] sm:$0xff] %v1120_v21 }
 0x4b7 PF: > { %p1617_p5 = scmp.ne.s32.totalorder %s2602_s21, 3 }
 0x4b8   : > { %v2179_v61 = vpack.c.bf16 (!%p1617_p5), %v2875_v48, %v2867_v45  ;;  %v2181_v25 = vpack.c.bf16 (!%p1617_p5), %v2873_v47, %v2865_v44  ;;  %v2183_v20 = vpack.c.bf16 (!%p1617_p5), %v2887_v54, %v2881_v51  ;;  %v3220_v9 = vpack.c.bf16 (!%p1617_p5), %v2885_v53, %v2879_v50  ;;  %v3434_v53 = vld [vmem:[#allocation17_spill] sm:$0xff] (!%p1617_p5)  ;;  %v3440_v32 = vld [vmem:[#allocation22_spill] sm:$0xff] (!%p1617_p5)  ;;  %v3444_v39 = vld [vmem:[#allocation24_spill] sm:$0xff] (!%p1617_p5)  ;;  %s1634_s21 = smul.u32 (!%p1617_p5), 72, %s2871_s15 }
 0x4b9   : > { %1125 = sbr.rel (%p1617_p5) target bundleno = 1765 (0x6e5), region = 72  ;;  %v3224_v26 = vpack.c.bf16 (!%p1617_p5), %v2899_v60, %v2893_v57  ;;  %v2626_v31 = vmov (!%p1617_p5), 0.0|0.0   ;;  %v2212_v44 = vpack.c.bf16 (!%p1617_p5), %v2877_v49, %v2869_v46  ;;  %v2627_v45 = vmov (!%p1617_p5), 0.0   ;;  %v3431_v46 = vld [vmem:[#allocation13_spill] sm:$0xff] (!%p1617_p5)  ;;  %v3432_v49 = vld [vmem:[#allocation14_spill] sm:$0xff] (!%p1617_p5)  ;;  %v3446_v42 = vld [vmem:[#allocation28_spill] sm:$0xff] (!%p1617_p5) }
 0x4ba   : > { %2180 = vmatprep.subr.bf16.mxu0 (!%p1617_p5), %v2179_v61  ;;  %2211 = vmatprep.subr.bf16.mxu1 (!%p1617_p5), %v2626_v31  ;;  %v2215_v47 = vpack.c.bf16 (!%p1617_p5), %v2889_v55, %v2883_v52  ;;  %v2189_v48 = vpack.c.bf16 (!%p1617_p5), %v2897_v59, %v2891_v56  ;;  %v2191_v50 = vpack.c.bf16 (!%p1617_p5), %v2911_v2, %v2905_v63  ;;  %vm2628_vm2 = vmmov (!%p1617_p5), 0   ;;  %v3433_v52 = vld [vmem:[#allocation15_spill] sm:$0xff] (!%p1617_p5)  ;;  %v3435_v55 = vld [vmem:[#allocation20_spill] sm:$0xff] (!%p1617_p5)  ;;  %v3438_v60 = vld [vmem:[#allocation18_spill] sm:$0xff] (!%p1617_p5)  ;;  %s3291_s6 = scalar_lea.vmem (!%p1617_p5), [#allocation2], %s1634_s21 }
 0x4bb   : > { %2182 = vmatpush1.bf16.msra.mxu0 (!%p1617_p5), %v2181_v25  ;;  %1212 = vmatprep.mubr.f32.mxu0 (!%p1617_p5), %v2627_v45  ;;  %v2218_v51 = vpack.c.bf16 (!%p1617_p5), %v3432_v49, %v3431_v46  ;;  %v2193_v54 = vpack.c.bf16 (!%p1617_p5), %v3434_v53, %v3433_v52  ;;  %v3436_v56 = vld [vmem:[#allocation23_spill] sm:$0xff] (!%p1617_p5)  ;;  %v3437_v59 = vld [vmem:[#allocation16_spill] sm:$0xff] (!%p1617_p5)  ;;  %v3441_v34 = vld [vmem:[#allocation26_spill] sm:$0xff] (!%p1617_p5)  ;;  %v1133_v24 = vlaneseq (!%p1617_p5) }
 0x4bc   : > { %2184 = vmatprep.subr.bf16.mxu0 (!%p1617_p5), %v2183_v20  ;;  %2213 = vmatpush3.bf16.msra.mxu1 (!%p1617_p5), %v2212_v44  ;;  %v2195_v57 = vpack.c.bf16 (!%p1617_p5), %v3436_v56, %v3435_v55  ;;  %v2221_v63 = vpack.c.bf16 (!%p1617_p5), %v3438_v60, %v3437_v59  ;;  %v3439_v2 = vld [vmem:[#allocation19_spill] sm:$0xff] (!%p1617_p5)  ;;  %v3442_v36 = vld [vmem:[#allocation29_spill] sm:$0xff] (!%p1617_p5)  ;;  %v3447_v22 = vld [vmem:[#allocation32_spill] sm:$0xff] (!%p1617_p5) }
 0x4bd   : > { %2214 = vmatprep.subr.bf16.mxu1 (!%p1617_p5), %v2626_v31  ;;  %1917 = vmatprep.mubr.msk.f32.mxu1 (!%p1617_p5), %vm2628_vm2, %v2627_v45  ;;  %v2197_v33 = vpack.c.bf16 (!%p1617_p5), %v3440_v32, %v3439_v2  ;;  %v2199_v37 = vpack.c.bf16 (!%p1617_p5), %v3442_v36, %v3441_v34  ;;  %v3443_v38 = vld [vmem:[#allocation21_spill] sm:$0xff] (!%p1617_p5)  ;;  %v3448_v17 = vld [vmem:[#allocation35_spill] sm:$0xff] (!%p1617_p5)  ;;  %v3450_v30 = vld [vmem:[#allocation30_spill] sm:$0xff] (!%p1617_p5)  ;;  %v1134_v11 = vshrl.u32 (!%p1617_p5), %v1133_v24, 7 }
 0x4be   : > { %v2224_v40 = vpack.c.bf16 (!%p1617_p5), %v3444_v39, %v3443_v38  ;;  %v3445_v41 = vld [vmem:[#allocation25_spill] sm:$0xff] (!%p1617_p5)  ;;  %v2203_v14 = vpack.c.bf16 (!%p1617_p5), %v3448_v17, %v3447_v22  ;;  %v3449_v35 = vld [vmem:[#allocation27_spill] sm:$0xff] (!%p1617_p5)  ;;  %v3452_v12 = vld [vmem:[#allocation34_spill] sm:$0xff] (!%p1617_p5) }
 0x4bf   : > { %2186 = vmatpush1.bf16.msra.mxu0 (!%p1617_p5), %v3220_v9  ;;  %v2201_v43 = vpack.c.bf16 (!%p1617_p5), %v3446_v42, %v3445_v41  ;;  %v2227_v23 = vpack.c.bf16 (!%p1617_p5), %v3450_v30, %v3449_v35  ;;  %v3451_v18 = vld [vmem:[#allocation31_spill] sm:$0xff] (!%p1617_p5)  ;;  %v3453_v13 = vld [vmem:[#allocation38_spill] sm:$0xff] (!%p1617_p5)  ;;  %v3454_v27 = vld [vmem:[#allocation41_spill] sm:$0xff] (!%p1617_p5)  ;;  %v1135_v5 = vsub.s32 (!%p1617_p5), 0, %v1134_v11  ;;  %v1139_v15 = vsub.s32 (!%p1617_p5), 1, %v1134_v11 }
 0x4c0   : > { %2188 = vmatprep.subr.bf16.mxu0 %v3224_v26  ;;  %2216 = vmatpush3.bf16.msra.mxu1 %v2215_v47  ;;  %v2205_v4 = vpack.c.bf16 %v3452_v12, %v3451_v18  ;;  %v2207_v0 = vpack.c.bf16 %v3454_v27, %v3453_v13  ;;  %v3455_v6 = vld [vmem:[#allocation33_spill] sm:$0xff]  ;;  %v3456_v58 = vld [vmem:[#allocation36_spill] sm:$0xff]  ;;  %v3459_v7 = vld [vmem:[#allocation39_spill] sm:$0xff]  ;;  %v1143_v52 = vsub.s32 2, %v1134_v11 }
 0x4c1   : > { %2217 = vmatprep.subr.bf16.mxu1 %v2626_v31  ;;  %v2230_v62 = vpack.c.bf16 %v3456_v58, %v3455_v6  ;;  %v3457_v1 = vld [vmem:[#allocation37_spill] sm:$0xff]  ;;  %v3458_v3 = vld [vmem:[#allocation40_spill] sm:$0xff]  ;;  %v3460_v8 = vld [vmem:[#allocation42_spill] sm:$0xff]  ;;  %v1136_v16 = vrot.slane %v2966_v28, %v1135_v5  ;;  %v1140_v21 = vrot.slane %v2966_v28, %v1139_v15 }
 0x4c2   : > { %v2209_v19 = vpack.c.bf16 %v3458_v3, %v3457_v1  ;;  %v2233_v10 = vpack.c.bf16 %v3460_v8, %v3459_v7  ;;  %v1144_v53 = vrot.slane %v2966_v28, %v1143_v52  ;;  %v1131_v59 = vld [vmem:[%s3291_s6 + $0x10] sm:$0xff]  ;;  %v1622_v28 = vld [vmem:[%s3291_s6 + $0x18] sm:$0xff]  ;;  %v1623_v17 = vld [vmem:[%s3291_s6 + $0x20] sm:$0xff] }
 0x4c3   : > { %2190 = vmatpush1.bf16.msra.mxu0 %v2189_v48  ;;  %v1624_v27 = vld [vmem:[%s3291_s6 + $0x28] sm:$0xff] }
 0x4c4   : > { %2192 = vmatprep.subr.bf16.mxu0 %v2191_v50  ;;  %2219 = vmatpush3.bf16.msra.mxu1 %v2218_v51 }
 0x4c5   : > { %2220 = vmatprep.subr.bf16.mxu1 %v2626_v31 }
 0x4c7   : > { %2194 = vmatpush1.bf16.msra.mxu0 %v2193_v54 }
 0x4c8   : > { %2196 = vmatprep.subr.bf16.mxu0 %v2195_v57  ;;  %2222 = vmatpush3.bf16.msra.mxu1 %v2221_v63 }
 0x4c9   : > { %2223 = vmatprep.subr.bf16.mxu1 %v2626_v31 }
 0x4cb   : > { %2198 = vmatpush1.bf16.msra.mxu0 %v2197_v33 }
 0x4cc   : > { %2200 = vmatprep.subr.bf16.mxu0 %v2199_v37  ;;  %2225 = vmatpush3.bf16.msra.mxu1 %v2224_v40 }
 0x4cd   : > { %2226 = vmatprep.subr.bf16.mxu1 %v2626_v31 }
 0x4cf   : > { %2202 = vmatpush1.bf16.msra.mxu0 %v2201_v43 }
 0x4d0   : > { %2204 = vmatprep.subr.bf16.mxu0 %v2203_v14  ;;  %2228 = vmatpush3.bf16.msra.mxu1 %v2227_v23 }
 0x4d1   : > { %2229 = vmatprep.subr.bf16.mxu1 %v2626_v31 }
 0x4d3   : > { %2206 = vmatpush1.bf16.msra.mxu0 %v2205_v4 }
 0x4d4   : > { %2208 = vmatprep.subr.bf16.mxu0 %v2207_v0  ;;  %2231 = vmatpush3.bf16.msra.mxu1 %v2230_v62 }
 0x4d5   : > { %2232 = vmatprep.subr.bf16.mxu1 %v2626_v31 }
 0x4d7   : > { %2210 = vmatpush1.bf16.msra.mxu0 %v2209_v19 }
 0x4d8   : > { %2236 = vmatprep.subr.bf16.mxu0 %v2179_v61  ;;  %2234 = vmatpush3.bf16.msra.mxu1 %v2233_v10  ;;  %v1129_v61 = vld [vmem:[%s3291_s6] sm:$0xff] }
 0x4d9   : > { %2267 = vmatprep.subr.bf16.mxu1 %v2626_v31 }
 0x4da   : > { %1213 = vmatmul.mubr.f32.vlgmr.msra.gmra.mrb[0].mxu0 %v2968_v29 }
 0x4db   : > { %2238 = vmatpush1.bf16.msra.mxu0 %v2181_v25  ;;  %1380 = vmatprep.mubr.f32.mxu0 %v2627_v45 }
 0x4dc   : > { %2240 = vmatprep.subr.bf16.mxu0 %v2183_v20  ;;  %1918 = vmatmul.mubr.f32.vlgmr.msra.gmra.mrb[0].mxu1 %v2968_v29 }
 0x4dd   : > { %2269 = vmatpush3.bf16.msra.mxu1 %v2212_v44  ;;  %1952 = vmatprep.mubr.msk.f32.mxu1 %vm2628_vm2, %v2627_v45  ;;  %v1130_v44 = vld [vmem:[%s3291_s6 + $0x8] sm:$0xff] }
 0x4de   : > { %2270 = vmatprep.subr.bf16.mxu1 %v2626_v31 }
 0x4df   : > { %2242 = vmatpush1.bf16.msra.mxu0 %v3220_v9 }
 0x4e0   : > { %2244 = vmatprep.subr.bf16.mxu0 %v3224_v26 }
 0x4e1   : > { %2272 = vmatpush3.bf16.msra.mxu1 %v2215_v47 }
 0x4e2   : > { %2273 = vmatprep.subr.bf16.mxu1 %v2626_v31 }
 0x4e3   : > { %2246 = vmatpush1.bf16.msra.mxu0 %v2189_v48 }
 0x4e4   : > { %2248 = vmatprep.subr.bf16.mxu0 %v2191_v50 }
 0x4e5   : > { %2275 = vmatpush3.bf16.msra.mxu1 %v2218_v51 }
 0x4e6   : > { %2276 = vmatprep.subr.bf16.mxu1 %v2626_v31 }
 0x4e7   : > { %2250 = vmatpush1.bf16.msra.mxu0 %v2193_v54 }
 0x4e8   : > { %2252 = vmatprep.subr.bf16.mxu0 %v2195_v57 }
 0x4e9   : > { %2278 = vmatpush3.bf16.msra.mxu1 %v2221_v63 }
 0x4ea   : > { %2279 = vmatprep.subr.bf16.mxu1 %v2626_v31 }
 0x4eb   : > { %2254 = vmatpush1.bf16.msra.mxu0 %v2197_v33 }
 0x4ec   : > { %2256 = vmatprep.subr.bf16.mxu0 %v2199_v37 }
 0x4ed   : > { %2281 = vmatpush3.bf16.msra.mxu1 %v2224_v40 }
 0x4ee   : > { %2282 = vmatprep.subr.bf16.mxu1 %v2626_v31 }
 0x4ef   : > { %2258 = vmatpush1.bf16.msra.mxu0 %v2201_v43 }
 0x4f0   : > { %2260 = vmatprep.subr.bf16.mxu0 %v2203_v14 }
 0x4f1   : > { %2284 = vmatpush3.bf16.msra.mxu1 %v2227_v23 }
 0x4f2   : > { %2285 = vmatprep.subr.bf16.mxu1 %v2626_v31 }
 0x4f3   : > { %2262 = vmatpush1.bf16.msra.mxu0 %v2205_v4 }
 0x4f4   : > { %2264 = vmatprep.subr.bf16.mxu0 %v2207_v0 }
 0x4f5   : > { %2287 = vmatpush3.bf16.msra.mxu1 %v2230_v62 }
 0x4f6   : > { %2288 = vmatprep.subr.bf16.mxu1 %v2626_v31 }
 0x4f7   : > { %2266 = vmatpush1.bf16.msra.mxu0 %v2209_v19 }
 0x4f9   : > { %2290 = vmatpush3.bf16.msra.mxu1 %v2233_v10 }
 0x5ad   : > { %v1214_v25 = vpop.f32.mrb[0].mxu0 }
 0x5ae   : > { %v1215_v20 = vadd.f32 %v1214_v25, %v1136_v16  ;;  %v1216_v9 = vpop.f32.mrb[1].mxu0 }
 0x5af   : > { %v1217_v26 = vadd.f32 %v1216_v9, %v1140_v21  ;;  %v1285_v45 = vpop.f32.mrb[0].mxu1 }
 0x5b0   : > { %v1289_v31 = vadd.f32 %v1215_v20, %v1129_v61  ;;  %v1919_v47 = vpop.f32.mrb[1].mxu1  ;;  %v1286_v56 = vadd.f32 %v1285_v45, %v1144_v53 }
 0x5b1   : > { %v1296_v50 = vadd.f32 %v1217_v26, %v1130_v44 }
 0x5b2   : > { %v1619_v48 = vmul.f32 -1.442695, %v1289_v31 }
 0x5b3   : > { %v1620_v46 = vmul.f32 -1.442695, %v1296_v50 }
 0x5b4   : > { %2420 = vpow2.f32 %v1619_v48 }
 0x5b5   : > { %2422 = vpow2.f32 %v1620_v46 }
 0x5be   : > { %v2421_v49 = vpop.eup %2420 }
 0x5bf   : > { %v1293_v51 = vadd.f32 1.0, %v2421_v49  ;;  %v2423_v54 = vpop.eup %2422 }
 0x5c0   : > { %v1300_v55 = vadd.f32 1.0, %v2423_v54 }
 0x5c1   : > { %2424 = vrcp.f32 %v1293_v51 }
 0x5c2   : > { %2426 = vrcp.f32 %v1300_v55 }
 0x5cb   : > { %v2425_v57 = vpop.eup %2424 }
 0x5cc   : > { %v1303_v60 = vmul.f32 %v2425_v57, %v1286_v56  ;;  %v2427_v2 = vpop.eup %2426 }
 0x5cd   : > { %v1306_v32 = vsub.f32 1.0, %v2427_v2  ;;  %v1308_v36 = vmul.f32 %v2427_v2, %v2968_v29 }
 0x5ce   : > { %v1304_v63 = vadd.f32 %v1303_v60, %v1131_v59 }
 0x5d0   : > { %2428 = vtanh.f32 %v1304_v63 }
 0x5da   : > { %v2429_v33 = vpop.eup %2428 }
 0x5db   : > { %v1307_v34 = vmul.f32 %v2429_v33, %v1306_v32 }
 0x5dd   : > { %v1309_v37 = vadd.f32 %v1308_v36, %v1307_v34 }
 0x5df   : > { %1381 = vmatmul.mubr.f32.vlgmr.msra.gmra.mrb[2].mxu0 %v1309_v37  ;;  %1953 = vmatmul.mubr.f32.vlgmr.msra.gmra.mrb[2].mxu1 %v1309_v37 }
 0x6b2   : > { %v1382_v38 = vpop.f32.mrb[2].mxu0  ;;  %v1453_v39 = vpop.f32.mrb[2].mxu1 }
 0x6b3   : > { %v1383_v40 = vadd.f32 %v1382_v38, %v1136_v16  ;;  %v1384_v41 = vpop.f32.mrb[3].mxu0  ;;  %v1954_v42 = vpop.f32.mrb[3].mxu1  ;;  %v1454_v4 = vadd.f32 %v1453_v39, %v1144_v53 }
 0x6b4   : > { %v1385_v43 = vadd.f32 %v1384_v41, %v1140_v21 }
 0x6b5   : > { %v1457_v22 = vadd.f32 %v1622_v28, %v1383_v40 }
 0x6b6   : > { %v1464_v35 = vadd.f32 %v1623_v17, %v1385_v43 }
 0x6b7   : > { %v1625_v14 = vmul.f32 -1.442695, %v1457_v22 }
 0x6b8   : > { %v1626_v30 = vmul.f32 -1.442695, %v1464_v35 }
 0x6b9   : > { %2430 = vpow2.f32 %v1625_v14 }
 0x6ba   : > { %2432 = vpow2.f32 %v1626_v30 }
 0x6c3   : > { %v2431_v23 = vpop.eup %2430 }
 0x6c4   : > { %v1461_v29 = vadd.f32 1.0, %v2431_v23  ;;  %v2433_v18 = vpop.eup %2432 }
 0x6c5   : > { %v1468_v12 = vadd.f32 1.0, %v2433_v18 }
 0x6c6   : > { %2434 = vrcp.f32 %v1461_v29 }
 0x6c7   : > { %2436 = vrcp.f32 %v1468_v12 }
 0x6d0   : > { %v2435_v13 = vpop.eup %2434 }
 0x6d1   : > { %v1471_v0 = vmul.f32 %v2435_v13, %v1454_v4  ;;  %v2437_v58 = vpop.eup %2436 }
 0x6d2   : > { %v1474_v62 = vsub.f32 1.0, %v2437_v58  ;;  %v1476_v19 = vmul.f32 %v2437_v58, %v1309_v37 }
 0x6d3   : > { %v1472_v6 = vadd.f32 %v1624_v27, %v1471_v0 }
 0x6d5   : > { %2438 = vtanh.f32 %v1472_v6 }
 0x6df   : > { %v2439_v1 = vpop.eup %2438 }
 0x6e0   : > { %v1475_v3 = vmul.f32 %v2439_v1, %v1474_v62 }
 0x6e2   : > { %v1477_v7 = vadd.f32 %v1476_v19, %v1475_v3 }
 0x6e4   : > { %1478 = vst [vmem:[#allocation9] sm:$0xff] %v1477_v7 }
 0x6e5 PF: > { %p3303_p10 = scmp.eq.s32.totalorder %s1588_s24, 3  ;;  %s2629_s8 = smov [#allocation9]  }
 0x6e6   : > { %s1488_s9 = sshll.u32 %s2629_s8, 4  ;;  %s1489_s9 = int_to_ptr.vmem [resolvable:$true] %s1488_s9 }
 0x6e7   : > { %s2526_s7 = scalar_lea.vmem %s1489_s9, 128  ;;  %p2533_p2 = scmp.lt.s32.totalorder %s1489_s9, %s1489_s9 }
 0x6e8   : > { %p2527_p11 = scmp.ne.s32.totalorder %s1489_s9, %s2526_s7  ;;  %p2534_p6 = scmp.lt.s32.totalorder %s2526_s7, %s2526_s7 }
 0x6ea   : > { %p2528_p7 = pnand %p2527_p11, %p3303_p10  ;;  %p2535_p9 = por %p2534_p6, %p2533_p2 }
 0x6ec   : > { %p2529_p13 = pneg %p2528_p7 }
 0x6ee   : > { %p2536_p0 = pnand %p2535_p9, %p2529_p13 }
 0x6f0   : > { %2539 = shalt.err (!%p2536_p0)
}
 0x6f1   : > { %s2540_s24 = scalar_lea.hbm %s3352_s5, 128 }
 0x6f2   : > { %p2541_p3 = scmp.ne.s32.totalorder %s3352_s5, %s2540_s24  ;;  %p2546_p1 = scmp.lt.u32.totalorder %s2540_s24, %s3352_s5 }
 0x6f4   : > { %p2542_p8 = pnand %p2541_p3, %p3303_p10 }
 0x6f6   : > { %p2543_p12 = pneg %p2542_p8 }
 0x6f8   : > { %p2548_p4 = pnand %p2546_p1, %p2543_p12 }
 0x6fa   : > { %2551 = shalt.err (!%p2548_p4)
}
 0x6fb   : > { %2304 = dma.vmem_to_hbm [thread:$0]  (%p3303_p10), %s1489_s9, 128, %s3352_s5, [#allocation5]  }
 0x6fc   : > { %2585 = dma.done.wait (%p3303_p10), [#allocation5], 128  }
 0x6fd   : > { %2587 = vsyncadd (%p3303_p10), [#allocation5], 4294967168 }
 0x6fe PF: > { %s20_s23 = sadd.s32 1, %s2610_s23   ;;  %s3462_s30 = smov %s3469_s18 }
 0x6ff   : > { %p17_p5 = scmp.ge.s32.totalorder %s20_s23, 6   ;;  %s3463_s18 = smov %s2594_s19 }
 0x700   : > { %s3464_s19 = smov %s2598_s20  ;;  %s3465_s20 = smov %s2784_s29 }
 0x701   : > { %s3466_s21 = smov %s2606_s22  ;;  %s3467_s22 = smov %s3462_s30 }
 0x702   :  { %19 = sbr.rel (!%p17_p5) target bundleno = 6 (0x6), region = 112 }
 0x709   :  { %1501 = vsyncpa [#allocation4], 1 }
 0x70a   :  { %1503 = vsyncpa [#allocation4 + $0x1], 1 }
 0x70b   :  { %1504 = vsyncpa [#allocation7], 1 }
 0x70c   :  { %1505 = vsyncpa [#allocation5], 1 }
 0x70d   :  { %1507 = vsyncpa [#allocation5 + $0x1], 1 }

</bundles_post_ra>
